<compile_context>
chip_gen: v7x
topology: tpu7x:2x2x1
jax: 0.10.0
libtpu: 0.0.40
codegen_flags: <defaults>
</compile_context>

<pallas_src>
import jax
import jax.numpy as jnp
from jax import lax
from jax.experimental import pallas as pl
from jax.experimental.pallas import tpu as pltpu


def _round_up(n, m):
    return ((n + m - 1) // m) * m


def _netg_kernel(x_ref, z_ref, m_ref,
                 w1a_ref, w1b_ref, b1_ref, w2_ref, b2_ref, w3_ref, b3_ref,
                 o_ref):
    # Batch-major (TILE_B, F) blocks streamed straight from HBM (no wrapper transpose).
    x = x_ref[...].astype(jnp.float32)
    z = z_ref[...].astype(jnp.float32)
    m = m_ref[...].astype(jnp.float32)

    # Mask blend in f32 on the VPU. m is {0,1} so this is an exact select.
    inp = (m * x + (1.0 - m) * z).astype(jnp.bfloat16)        # (TB, F)
    m16 = m.astype(jnp.bfloat16)                              # (TB, F)

    # fc1 on cat([inp, m], dim=1) == W1[:, :F] @ inp^T + W1[:, F:] @ m^T.
    # dot_general contracts the feature axis of the batch-major activations
    # directly (trans-B matmul), producing a lane-dense (256, TB) activation.
    dn_tb = (((1,), (1,)), ((), ()))
    h1 = (lax.dot_general(w1a_ref[...], inp, dn_tb,
                          preferred_element_type=jnp.float32)
          + lax.dot_general(w1b_ref[...], m16, dn_tb,
                            preferred_element_type=jnp.float32)
          + b1_ref[...])                                      # (256, TB) f32
    h1 = jnp.maximum(h1, 0.0).astype(jnp.bfloat16)            # ReLU

    h2 = (jnp.dot(w2_ref[...], h1, preferred_element_type=jnp.float32)
          + b2_ref[...])                                      # (128, TB) f32
    h2 = jnp.maximum(h2, 0.0).astype(jnp.bfloat16)            # ReLU

    # fc3 back to batch-major: (TB, F) = h2^T @ W3^T, so the store matches the
    # (B, F) output layout directly.
    logits = (lax.dot_general(h2, w3_ref[...], (((0,), (1,)), ((), ())),
                              preferred_element_type=jnp.float32)
              + b3_ref[...])                                  # (TB, F) f32
    o_ref[...] = jax.nn.sigmoid(logits)                       # Sigmoid (EUP)


def netg_forward(x, z, m, params, *, tile_b=4096, input_buffers=2):
    """x, z, m: (B, F) arrays (f32 or bf16). params: see init_netg_params.

    tile_b: max batch-tile width. 4096 is the v6e/v7x sweet spot and also works on
            v5e because vmem_limit_bytes is raised explicitly (lower to 2048 if VMEM
            pressure from co-resident kernels matters).
    input_buffers: pipeline depth for the x/z/m streams (bump to 3 on v7x if xprof
            shows exposed input DMA).
    """
    B, F = x.shape

    # ---- batch tiling: tile is a multiple of 128, minimal last-tile padding ----
    tile_b = max(128, min(int(tile_b), _round_up(B, 128)))
    n_tiles = -(-B // tile_b)
    tile_b = _round_up(-(-B // n_tiles), 128)     # rebalance: <=127 padded rows/tile
    b_pad = n_tiles * tile_b

    def pad(a):
        # Only touches HBM again when B is not already tile-aligned.
        return a if b_pad == B else jnp.pad(a, ((0, b_pad - B), (0, 0)))

    xp, zp, mp = pad(x), pad(z), pad(m)

    w1 = params["w1"]
    w1a, w1b = w1[:, :F], w1[:, F:]               # fc1 split == cat([inp, m]) @ W1^T
    w2, w3 = params["w2"], params["w3"]
    b1, b2, b3 = params["b1"], params["b2"], params["b3"]

    if input_buffers == 2:
        data_spec = pl.BlockSpec((tile_b, F), lambda i: (i, 0))
    else:
        data_spec = pl.BlockSpec((tile_b, F), lambda i: (i, 0),
                                 pipeline_mode=pl.Buffered(input_buffers))

    def const_spec(a):
        # Constant block index -> Pallas keeps the block VMEM-resident across steps.
        return pl.BlockSpec(a.shape, lambda i: (0, 0))

    # Per-tile VMEM footprint: the (tile_b, F<=128) f32 stream buffers are lane-padded
    # to 128 in VMEM and double-buffered; h1/h2 intermediates are dense.
    est = (4 * 2 * tile_b * 128 * 4               # x, z, m, out stream buffers
           + tile_b * (256 + 128) * 4             # h1, h2 f32
           + tile_b * (256 + 128 + 2 * F) * 2     # bf16 temporaries
           + (1 << 20))                           # weights + slack
    vmem_limit = int(min(48 * 2 ** 20, max(16 * 2 ** 20, 1.5 * est)))

    def run(batch_sem):
        return pl.pallas_call(
            _netg_kernel,
            out_shape=jax.ShapeDtypeStruct((b_pad, F), jnp.float32),
            grid=(n_tiles,),
            in_specs=[data_spec, data_spec, data_spec,
                      const_spec(w1a), const_spec(w1b), const_spec(b1),
                      const_spec(w2), const_spec(b2),
                      const_spec(w3), const_spec(b3)],
            out_specs=pl.BlockSpec((tile_b, F), lambda i: (i, 0)),
            compiler_params=pltpu.CompilerParams(
                dimension_semantics=(batch_sem,),
                vmem_limit_bytes=vmem_limit),
        )(xp, zp, mp, w1a, w1b, b1, w2, b2, w3, b3)

    # CORE_PARALLEL actually splits the batch loop across v7x's two TensorCores
    # (plain "parallel" is a near no-op); fall back gracefully on chips/toolchains
    # that reject it. (Fallback only triggers when called eagerly.)
    try:
        out = run(pltpu.CORE_PARALLEL)
    except Exception:
        out = run(pltpu.PARALLEL)

    return out if b_pad == B else out[:B]


def init_netg_params(key, feature_dim):
    """Xavier-normal weights in torch (out, in) layout, stored bf16 for the MXU.
    Biases follow torch.nn.Linear's default U(-1/sqrt(fan_in), 1/sqrt(fan_in))
    (the xavier re-init in the module only touches weights); stored f32.
    Shapes: w1 (256, 2F), w2 (128, 256), w3 (F, 128); b1 (256,1), b2 (128,1), b3 (1,F).
    """
    def xavier(k, fan_out, fan_in):
        std = (2.0 / (fan_in + fan_out)) ** 0.5
        w = std * jax.random.normal(k, (fan_out, fan_in), dtype=jnp.float32)
        return w.astype(jnp.bfloat16)

    def bias(k, fan_in, shape):
        bound = 1.0 / (fan_in ** 0.5)
        return jax.random.uniform(k, shape, dtype=jnp.float32,
                                  minval=-bound, maxval=bound)

    ks = jax.random.split(key, 6)
    F = feature_dim
    return {
        "w1": xavier(ks[0], 256, 2 * F), "b1": bias(ks[1], 2 * F, (256, 1)),
        "w2": xavier(ks[2], 128, 256),   "b2": bias(ks[3], 256, (128, 1)),
        "w3": xavier(ks[4], F, 128),     "b3": bias(ks[5], 128, (1, F)),
    }


def netg_reference(x, z, m, params):
    """Pure-JAX reference with the same bf16-operand / f32-accumulate path and the
    same fc1 split (mathematically identical to cat([inp, m]) @ W1^T)."""
    F = x.shape[1]
    w1a = params["w1"][:, :F]
    w1b = params["w1"][:, F:]
    inp = (m * x + (1.0 - m) * z).astype(jnp.bfloat16)
    m16 = m.astype(jnp.bfloat16)
    h1 = (jnp.dot(inp, w1a.T, preferred_element_type=jnp.float32)
          + jnp.dot(m16, w1b.T, preferred_element_type=jnp.float32)
          + params["b1"].T)
    h1 = jax.nn.relu(h1)
    h2 = jax.nn.relu(jnp.dot(h1.astype(jnp.bfloat16), params["w2"].T,
                             preferred_element_type=jnp.float32) + params["b2"].T)
    logits = jnp.dot(h2.astype(jnp.bfloat16), params["w3"].T,
                     preferred_element_type=jnp.float32) + params["b3"]
    return jax.nn.sigmoid(logits)


if __name__ == "__main__":
    B, F = 8, 16
    key = jax.random.PRNGKey(0)
    kx, kz, km, kp = jax.random.split(key, 4)

    x = jax.random.uniform(kx, (B, F), dtype=jnp.float32)            # "observed" data
    z = jax.random.uniform(kz, (B, F), dtype=jnp.float32)            # noise
    m = (jax.random.uniform(km, (B, F)) > 0.5).astype(jnp.float32)   # missing mask

    params = init_netg_params(kp, F)

    out = jax.block_until_ready(netg_forward(x, z, m, params))
    ref = netg_reference(x, z, m, params)

    assert out.shape == (B, F)
    assert jnp.allclose(out, ref, atol=1e-4, rtol=1e-4), "mismatch vs reference"

    # TODO(synk): the per-call xavier re-init inside NetG.forward() (fresh RNG draw every
    # forward) is intentionally not reproduced; weights are initialized once.

    print("KERNEL_OK")
</pallas_src>

<mosaic_0001>
module attributes {stable_mosaic.version = 11 : i64} {
  func.func @_netg_kernel(%arg0: i32, %arg1: memref<128x16xf32, #tpu.memory_space<vmem>>, %arg2: memref<128x16xf32, #tpu.memory_space<vmem>>, %arg3: memref<128x16xf32, #tpu.memory_space<vmem>>, %arg4: memref<256x16xbf16, #tpu.memory_space<vmem>>, %arg5: memref<256x16xbf16, #tpu.memory_space<vmem>>, %arg6: memref<256x1xf32, #tpu.memory_space<vmem>>, %arg7: memref<128x256xbf16, #tpu.memory_space<vmem>>, %arg8: memref<128x1xf32, #tpu.memory_space<vmem>>, %arg9: memref<16x128xbf16, #tpu.memory_space<vmem>>, %arg10: memref<1x16xf32, #tpu.memory_space<vmem>>, %arg11: memref<128x16xf32, #tpu.memory_space<vmem>>) attributes {dimension_semantics = [#tpu.dimension_semantics<core_parallel>], iteration_bounds = array<i64: 1>, scalar_prefetch = 0 : i64, scratch_operands = 0 : i64, tpu.core_type = #tpu.core_type<tc>, window_params = [{transform_indices = @transform_0, window_bounds = array<i64: 128, 16>}, {transform_indices = @transform_1, window_bounds = array<i64: 128, 16>}, {transform_indices = @transform_2, window_bounds = array<i64: 128, 16>}, {pipeline_mode = #tpu.pipeline_mode<synchronous>, transform_indices = @transform_3, window_bounds = array<i64: 256, 16>}, {pipeline_mode = #tpu.pipeline_mode<synchronous>, transform_indices = @transform_4, window_bounds = array<i64: 256, 16>}, {pipeline_mode = #tpu.pipeline_mode<synchronous>, transform_indices = @transform_5, window_bounds = array<i64: 256, 1>}, {pipeline_mode = #tpu.pipeline_mode<synchronous>, transform_indices = @transform_6, window_bounds = array<i64: 128, 256>}, {pipeline_mode = #tpu.pipeline_mode<synchronous>, transform_indices = @transform_7, window_bounds = array<i64: 128, 1>}, {pipeline_mode = #tpu.pipeline_mode<synchronous>, transform_indices = @transform_8, window_bounds = array<i64: 16, 128>}, {pipeline_mode = #tpu.pipeline_mode<synchronous>, transform_indices = @transform_9, window_bounds = array<i64: 1, 16>}, {transform_indices = @transform_10, window_bounds = array<i64: 128, 16>}]} {
    %c0 = arith.constant 0 : index
    %c0_0 = arith.constant 0 : index
    %0 = vector.load %arg1[%c0, %c0_0] : memref<128x16xf32, #tpu.memory_space<vmem>>, vector<128x16xf32>
    %c0_1 = arith.constant 0 : index
    %c0_2 = arith.constant 0 : index
    %1 = vector.load %arg2[%c0_1, %c0_2] : memref<128x16xf32, #tpu.memory_space<vmem>>, vector<128x16xf32>
    %c0_3 = arith.constant 0 : index
    %c0_4 = arith.constant 0 : index
    %2 = vector.load %arg3[%c0_3, %c0_4] : memref<128x16xf32, #tpu.memory_space<vmem>>, vector<128x16xf32>
    %3 = arith.mulf %2, %0 : vector<128x16xf32>
    %cst = arith.constant 1.000000e+00 : f32
    %4 = vector.broadcast %cst : f32 to vector<128x16xf32>
    %5 = arith.subf %4, %2 : vector<128x16xf32>
    %6 = arith.mulf %5, %1 : vector<128x16xf32>
    %7 = arith.addf %3, %6 : vector<128x16xf32>
    %8 = arith.truncf %7 : vector<128x16xf32> to vector<128x16xbf16>
    %9 = arith.truncf %2 : vector<128x16xf32> to vector<128x16xbf16>
    %c0_5 = arith.constant 0 : index
    %c0_6 = arith.constant 0 : index
    %10 = vector.load %arg4[%c0_5, %c0_6] : memref<256x16xbf16, #tpu.memory_space<vmem>>, vector<256x16xbf16>
    %cst_7 = arith.constant dense<0.000000e+00> : vector<256x128xf32>
    %11 = tpu.matmul %10, %8, %cst_7 {dimension_numbers = #tpu.dot_dimension_numbers<[1], [1], [0], [0], [0, 0, 1, 0], [], []>} : vector<256x16xbf16>, vector<128x16xbf16>, vector<256x128xf32> -> vector<256x128xf32>
    %c0_8 = arith.constant 0 : index
    %c0_9 = arith.constant 0 : index
    %12 = vector.load %arg5[%c0_8, %c0_9] : memref<256x16xbf16, #tpu.memory_space<vmem>>, vector<256x16xbf16>
    %cst_10 = arith.constant dense<0.000000e+00> : vector<256x128xf32>
    %13 = tpu.matmul %12, %9, %cst_10 {dimension_numbers = #tpu.dot_dimension_numbers<[1], [1], [0], [0], [0, 0, 1, 0], [], []>} : vector<256x16xbf16>, vector<128x16xbf16>, vector<256x128xf32> -> vector<256x128xf32>
    %14 = arith.addf %11, %13 : vector<256x128xf32>
    %c0_11 = arith.constant 0 : index
    %c0_12 = arith.constant 0 : index
    %15 = vector.load %arg6[%c0_11, %c0_12] : memref<256x1xf32, #tpu.memory_space<vmem>>, vector<256x1xf32>
    %16 = vector.broadcast %15 : vector<256x1xf32> to vector<256x128xf32>
    %17 = arith.addf %14, %16 : vector<256x128xf32>
    %cst_13 = arith.constant 0.000000e+00 : f32
    %18 = vector.broadcast %cst_13 : f32 to vector<256x128xf32>
    %19 = arith.maximumf %17, %18 : vector<256x128xf32>
    %20 = arith.truncf %19 : vector<256x128xf32> to vector<256x128xbf16>
    %c0_14 = arith.constant 0 : index
    %c0_15 = arith.constant 0 : index
    %21 = vector.load %arg7[%c0_14, %c0_15] : memref<128x256xbf16, #tpu.memory_space<vmem>>, vector<128x256xbf16>
    %cst_16 = arith.constant dense<0.000000e+00> : vector<128x128xf32>
    %22 = tpu.matmul %21, %20, %cst_16 {dimension_numbers = #tpu.dot_dimension_numbers<[1], [0], [0], [1], [0, 0, 1, 1], [], []>} : vector<128x256xbf16>, vector<256x128xbf16>, vector<128x128xf32> -> vector<128x128xf32>
    %c0_17 = arith.constant 0 : index
    %c0_18 = arith.constant 0 : index
    %23 = vector.load %arg8[%c0_17, %c0_18] : memref<128x1xf32, #tpu.memory_space<vmem>>, vector<128x1xf32>
    %24 = vector.broadcast %23 : vector<128x1xf32> to vector<128x128xf32>
    %25 = arith.addf %22, %24 : vector<128x128xf32>
    %cst_19 = arith.constant 0.000000e+00 : f32
    %26 = vector.broadcast %cst_19 : f32 to vector<128x128xf32>
    %27 = arith.maximumf %25, %26 : vector<128x128xf32>
    %28 = arith.truncf %27 : vector<128x128xf32> to vector<128x128xbf16>
    %c0_20 = arith.constant 0 : index
    %c0_21 = arith.constant 0 : index
    %29 = vector.load %arg9[%c0_20, %c0_21] : memref<16x128xbf16, #tpu.memory_space<vmem>>, vector<16x128xbf16>
    %cst_22 = arith.constant dense<0.000000e+00> : vector<128x16xf32>
    %30 = tpu.matmul %28, %29, %cst_22 {dimension_numbers = #tpu.dot_dimension_numbers<[0], [1], [1], [0], [0, 1, 1, 0], [], []>} : vector<128x128xbf16>, vector<16x128xbf16>, vector<128x16xf32> -> vector<128x16xf32>
    %c0_23 = arith.constant 0 : index
    %c0_24 = arith.constant 0 : index
    %31 = vector.load %arg10[%c0_23, %c0_24] : memref<1x16xf32, #tpu.memory_space<vmem>>, vector<1x16xf32>
    %32 = vector.broadcast %31 : vector<1x16xf32> to vector<128x16xf32>
    %33 = arith.addf %30, %32 : vector<128x16xf32>
    %34 = arith.negf %33 : vector<128x16xf32>
    %35 = math.exp %34 : vector<128x16xf32>
    %cst_25 = arith.constant 1.000000e+00 : f32
    %36 = vector.broadcast %cst_25 : f32 to vector<128x16xf32>
    %37 = arith.addf %36, %35 : vector<128x16xf32>
    %38 = arith.divf %36, %37 : vector<128x16xf32>
    %c0_26 = arith.constant 0 : index
    %c0_27 = arith.constant 0 : index
    %39 = vector.load %arg11[%c0_26, %c0_27] : memref<128x16xf32, #tpu.memory_space<vmem>>, vector<128x16xf32>
    tpu.vector_store %arg11[%c0_26, %c0_27], %38 {strides = array<i32>} : memref<128x16xf32, #tpu.memory_space<vmem>>, vector<128x16xf32>,
    return
  }
  func.func @transform_0(%arg0: i32) -> (i32, i32) {
    %c0_i32 = arith.constant 0 : i32
    %c0_i32_0 = arith.constant 0 : i32
    return %arg0, %c0_i32 : i32, i32
  }
  func.func @transform_1(%arg0: i32) -> (i32, i32) {
    %c0_i32 = arith.constant 0 : i32
    %c0_i32_0 = arith.constant 0 : i32
    return %arg0, %c0_i32 : i32, i32
  }
  func.func @transform_2(%arg0: i32) -> (i32, i32) {
    %c0_i32 = arith.constant 0 : i32
    %c0_i32_0 = arith.constant 0 : i32
    return %arg0, %c0_i32 : i32, i32
  }
  func.func @transform_3(%arg0: i32) -> (i32, i32) {
    %c0_i32 = arith.constant 0 : i32
    %c0_i32_0 = arith.constant 0 : i32
    %c0_i32_1 = arith.constant 0 : i32
    return %c0_i32, %c0_i32_0 : i32, i32
  }
  func.func @transform_4(%arg0: i32) -> (i32, i32) {
    %c0_i32 = arith.constant 0 : i32
    %c0_i32_0 = arith.constant 0 : i32
    %c0_i32_1 = arith.constant 0 : i32
    return %c0_i32, %c0_i32_0 : i32, i32
  }
  func.func @transform_5(%arg0: i32) -> (i32, i32) {
    %c0_i32 = arith.constant 0 : i32
    %c0_i32_0 = arith.constant 0 : i32
    %c0_i32_1 = arith.constant 0 : i32
    return %c0_i32, %c0_i32_0 : i32, i32
  }
  func.func @transform_6(%arg0: i32) -> (i32, i32) {
    %c0_i32 = arith.constant 0 : i32
    %c0_i32_0 = arith.constant 0 : i32
    %c0_i32_1 = arith.constant 0 : i32
    return %c0_i32, %c0_i32_0 : i32, i32
  }
  func.func @transform_7(%arg0: i32) -> (i32, i32) {
    %c0_i32 = arith.constant 0 : i32
    %c0_i32_0 = arith.constant 0 : i32
    %c0_i32_1 = arith.constant 0 : i32
    return %c0_i32, %c0_i32_0 : i32, i32
  }
  func.func @transform_8(%arg0: i32) -> (i32, i32) {
    %c0_i32 = arith.constant 0 : i32
    %c0_i32_0 = arith.constant 0 : i32
    %c0_i32_1 = arith.constant 0 : i32
    return %c0_i32, %c0_i32_0 : i32, i32
  }
  func.func @transform_9(%arg0: i32) -> (i32, i32) {
    %c0_i32 = arith.constant 0 : i32
    %c0_i32_0 = arith.constant 0 : i32
    %c0_i32_1 = arith.constant 0 : i32
    return %c0_i32, %c0_i32_0 : i32, i32
  }
  func.func @transform_10(%arg0: i32) -> (i32, i32) {
    %c0_i32 = arith.constant 0 : i32
    %c0_i32_0 = arith.constant 0 : i32
    return %arg0, %c0_i32 : i32, i32
  }
}

module attributes {stable_mosaic.version = 11 : i64} {
  func.func @_netg_kernel(%arg0: i32, %arg1: memref<128x16xf32, #tpu.memory_space<vmem>>, %arg2: memref<128x16xf32, #tpu.memory_space<vmem>>, %arg3: memref<128x16xf32, #tpu.memory_space<vmem>>, %arg4: memref<256x16xbf16, #tpu.memory_space<vmem>>, %arg5: memref<256x16xbf16, #tpu.memory_space<vmem>>, %arg6: memref<256x1xf32, #tpu.memory_space<vmem>>, %arg7: memref<128x256xbf16, #tpu.memory_space<vmem>>, %arg8: memref<128x1xf32, #tpu.memory_space<vmem>>, %arg9: memref<16x128xbf16, #tpu.memory_space<vmem>>, %arg10: memref<1x16xf32, #tpu.memory_space<vmem>>, %arg11: memref<128x16xf32, #tpu.memory_space<vmem>>) attributes {dimension_semantics = [#tpu.dimension_semantics<parallel>], iteration_bounds = array<i64: 1>, scalar_prefetch = 0 : i64, scratch_operands = 0 : i64, tpu.core_type = #tpu.core_type<tc>, window_params = [{transform_indices = @transform_0, window_bounds = array<i64: 128, 16>}, {transform_indices = @transform_1, window_bounds = array<i64: 128, 16>}, {transform_indices = @transform_2, window_bounds = array<i64: 128, 16>}, {pipeline_mode = #tpu.pipeline_mode<synchronous>, transform_indices = @transform_3, window_bounds = array<i64: 256, 16>}, {pipeline_mode = #tpu.pipeline_mode<synchronous>, transform_indices = @transform_4, window_bounds = array<i64: 256, 16>}, {pipeline_mode = #tpu.pipeline_mode<synchronous>, transform_indices = @transform_5, window_bounds = array<i64: 256, 1>}, {pipeline_mode = #tpu.pipeline_mode<synchronous>, transform_indices = @transform_6, window_bounds = array<i64: 128, 256>}, {pipeline_mode = #tpu.pipeline_mode<synchronous>, transform_indices = @transform_7, window_bounds = array<i64: 128, 1>}, {pipeline_mode = #tpu.pipeline_mode<synchronous>, transform_indices = @transform_8, window_bounds = array<i64: 16, 128>}, {pipeline_mode = #tpu.pipeline_mode<synchronous>, transform_indices = @transform_9, window_bounds = array<i64: 1, 16>}, {transform_indices = @transform_10, window_bounds = array<i64: 128, 16>}]} {
    %c0 = arith.constant 0 : index
    %c0_0 = arith.constant 0 : index
    %0 = vector.load %arg1[%c0, %c0_0] : memref<128x16xf32, #tpu.memory_space<vmem>>, vector<128x16xf32>
    %c0_1 = arith.constant 0 : index
    %c0_2 = arith.constant 0 : index
    %1 = vector.load %arg2[%c0_1, %c0_2] : memref<128x16xf32, #tpu.memory_space<vmem>>, vector<128x16xf32>
    %c0_3 = arith.constant 0 : index
    %c0_4 = arith.constant 0 : index
    %2 = vector.load %arg3[%c0_3, %c0_4] : memref<128x16xf32, #tpu.memory_space<vmem>>, vector<128x16xf32>
    %3 = arith.mulf %2, %0 : vector<128x16xf32>
    %cst = arith.constant 1.000000e+00 : f32
    %4 = vector.broadcast %cst : f32 to vector<128x16xf32>
    %5 = arith.subf %4, %2 : vector<128x16xf32>
    %6 = arith.mulf %5, %1 : vector<128x16xf32>
    %7 = arith.addf %3, %6 : vector<128x16xf32>
    %8 = arith.truncf %7 : vector<128x16xf32> to vector<128x16xbf16>
    %9 = arith.truncf %2 : vector<128x16xf32> to vector<128x16xbf16>
    %c0_5 = arith.constant 0 : index
    %c0_6 = arith.constant 0 : index
    %10 = vector.load %arg4[%c0_5, %c0_6] : memref<256x16xbf16, #tpu.memory_space<vmem>>, vector<256x16xbf16>
    %cst_7 = arith.constant dense<0.000000e+00> : vector<256x128xf32>
    %11 = tpu.matmul %10, %8, %cst_7 {dimension_numbers = #tpu.dot_dimension_numbers<[1], [1], [0], [0], [0, 0, 1, 0], [], []>} : vector<256x16xbf16>, vector<128x16xbf16>, vector<256x128xf32> -> vector<256x128xf32>
    %c0_8 = arith.constant 0 : index
    %c0_9 = arith.constant 0 : index
    %12 = vector.load %arg5[%c0_8, %c0_9] : memref<256x16xbf16, #tpu.memory_space<vmem>>, vector<256x16xbf16>
    %cst_10 = arith.constant dense<0.000000e+00> : vector<256x128xf32>
    %13 = tpu.matmul %12, %9, %cst_10 {dimension_numbers = #tpu.dot_dimension_numbers<[1], [1], [0], [0], [0, 0, 1, 0], [], []>} : vector<256x16xbf16>, vector<128x16xbf16>, vector<256x128xf32> -> vector<256x128xf32>
    %14 = arith.addf %11, %13 : vector<256x128xf32>
    %c0_11 = arith.constant 0 : index
    %c0_12 = arith.constant 0 : index
    %15 = vector.load %arg6[%c0_11, %c0_12] : memref<256x1xf32, #tpu.memory_space<vmem>>, vector<256x1xf32>
    %16 = vector.broadcast %15 : vector<256x1xf32> to vector<256x128xf32>
    %17 = arith.addf %14, %16 : vector<256x128xf32>
    %cst_13 = arith.constant 0.000000e+00 : f32
    %18 = vector.broadcast %cst_13 : f32 to vector<256x128xf32>
    %19 = arith.maximumf %17, %18 : vector<256x128xf32>
    %20 = arith.truncf %19 : vector<256x128xf32> to vector<256x128xbf16>
    %c0_14 = arith.constant 0 : index
    %c0_15 = arith.constant 0 : index
    %21 = vector.load %arg7[%c0_14, %c0_15] : memref<128x256xbf16, #tpu.memory_space<vmem>>, vector<128x256xbf16>
    %cst_16 = arith.constant dense<0.000000e+00> : vector<128x128xf32>
    %22 = tpu.matmul %21, %20, %cst_16 {dimension_numbers = #tpu.dot_dimension_numbers<[1], [0], [0], [1], [0, 0, 1, 1], [], []>} : vector<128x256xbf16>, vector<256x128xbf16>, vector<128x128xf32> -> vector<128x128xf32>
    %c0_17 = arith.constant 0 : index
    %c0_18 = arith.constant 0 : index
    %23 = vector.load %arg8[%c0_17, %c0_18] : memref<128x1xf32, #tpu.memory_space<vmem>>, vector<128x1xf32>
    %24 = vector.broadcast %23 : vector<128x1xf32> to vector<128x128xf32>
    %25 = arith.addf %22, %24 : vector<128x128xf32>
    %cst_19 = arith.constant 0.000000e+00 : f32
    %26 = vector.broadcast %cst_19 : f32 to vector<128x128xf32>
    %27 = arith.maximumf %25, %26 : vector<128x128xf32>
    %28 = arith.truncf %27 : vector<128x128xf32> to vector<128x128xbf16>
    %c0_20 = arith.constant 0 : index
    %c0_21 = arith.constant 0 : index
    %29 = vector.load %arg9[%c0_20, %c0_21] : memref<16x128xbf16, #tpu.memory_space<vmem>>, vector<16x128xbf16>
    %cst_22 = arith.constant dense<0.000000e+00> : vector<128x16xf32>
    %30 = tpu.matmul %28, %29, %cst_22 {dimension_numbers = #tpu.dot_dimension_numbers<[0], [1], [1], [0], [0, 1, 1, 0], [], []>} : vector<128x128xbf16>, vector<16x128xbf16>, vector<128x16xf32> -> vector<128x16xf32>
    %c0_23 = arith.constant 0 : index
    %c0_24 = arith.constant 0 : index
    %31 = vector.load %arg10[%c0_23, %c0_24] : memref<1x16xf32, #tpu.memory_space<vmem>>, vector<1x16xf32>
    %32 = vector.broadcast %31 : vector<1x16xf32> to vector<128x16xf32>
    %33 = arith.addf %30, %32 : vector<128x16xf32>
    %34 = arith.negf %33 : vector<128x16xf32>
    %35 = math.exp %34 : vector<128x16xf32>
    %cst_25 = arith.constant 1.000000e+00 : f32
    %36 = vector.broadcast %cst_25 : f32 to vector<128x16xf32>
    %37 = arith.addf %36, %35 : vector<128x16xf32>
    %38 = arith.divf %36, %37 : vector<128x16xf32>
    %c0_26 = arith.constant 0 : index
    %c0_27 = arith.constant 0 : index
    %39 = vector.load %arg11[%c0_26, %c0_27] : memref<128x16xf32, #tpu.memory_space<vmem>>, vector<128x16xf32>
    tpu.vector_store %arg11[%c0_26, %c0_27], %38 {strides = array<i32>} : memref<128x16xf32, #tpu.memory_space<vmem>>, vector<128x16xf32>,
    return
  }
  func.func @transform_0(%arg0: i32) -> (i32, i32) {
    %c0_i32 = arith.constant 0 : i32
    %c0_i32_0 = arith.constant 0 : i32
    return %arg0, %c0_i32 : i32, i32
  }
  func.func @transform_1(%arg0: i32) -> (i32, i32) {
    %c0_i32 = arith.constant 0 : i32
    %c0_i32_0 = arith.constant 0 : i32
    return %arg0, %c0_i32 : i32, i32
  }
  func.func @transform_2(%arg0: i32) -> (i32, i32) {
    %c0_i32 = arith.constant 0 : i32
    %c0_i32_0 = arith.constant 0 : i32
    return %arg0, %c0_i32 : i32, i32
  }
  func.func @transform_3(%arg0: i32) -> (i32, i32) {
    %c0_i32 = arith.constant 0 : i32
    %c0_i32_0 = arith.constant 0 : i32
    %c0_i32_1 = arith.constant 0 : i32
    return %c0_i32, %c0_i32_0 : i32, i32
  }
  func.func @transform_4(%arg0: i32) -> (i32, i32) {
    %c0_i32 = arith.constant 0 : i32
    %c0_i32_0 = arith.constant 0 : i32
    %c0_i32_1 = arith.constant 0 : i32
    return %c0_i32, %c0_i32_0 : i32, i32
  }
  func.func @transform_5(%arg0: i32) -> (i32, i32) {
    %c0_i32 = arith.constant 0 : i32
    %c0_i32_0 = arith.constant 0 : i32
    %c0_i32_1 = arith.constant 0 : i32
    return %c0_i32, %c0_i32_0 : i32, i32
  }
  func.func @transform_6(%arg0: i32) -> (i32, i32) {
    %c0_i32 = arith.constant 0 : i32
    %c0_i32_0 = arith.constant 0 : i32
    %c0_i32_1 = arith.constant 0 : i32
    return %c0_i32, %c0_i32_0 : i32, i32
  }
  func.func @transform_7(%arg0: i32) -> (i32, i32) {
    %c0_i32 = arith.constant 0 : i32
    %c0_i32_0 = arith.constant 0 : i32
    %c0_i32_1 = arith.constant 0 : i32
    return %c0_i32, %c0_i32_0 : i32, i32
  }
  func.func @transform_8(%arg0: i32) -> (i32, i32) {
    %c0_i32 = arith.constant 0 : i32
    %c0_i32_0 = arith.constant 0 : i32
    %c0_i32_1 = arith.constant 0 : i32
    return %c0_i32, %c0_i32_0 : i32, i32
  }
  func.func @transform_9(%arg0: i32) -> (i32, i32) {
    %c0_i32 = arith.constant 0 : i32
    %c0_i32_0 = arith.constant 0 : i32
    %c0_i32_1 = arith.constant 0 : i32
    return %c0_i32, %c0_i32_0 : i32, i32
  }
  func.func @transform_10(%arg0: i32) -> (i32, i32) {
    %c0_i32 = arith.constant 0 : i32
    %c0_i32_0 = arith.constant 0 : i32
    return %arg0, %c0_i32 : i32, i32
  }
}

</mosaic_0001>

<bundles_post_ra>
// kernel: tpu_custom_call.1
= control target key start
LH: loop header
LB: loop body
LE: loop exit
PB: predicated region body
PF: predicated region fallthrough
CT: control target
= control target key end

     0   :  { %s11_s13 = sld [smem:[#allocation0]]   ;;  %vm370_vm0 = vcmask 130048   ;;  %v2296_v1 = vmov 0   ;;  %s2986_s4 = inlined_call_operand.vmem [shape: bf16[256,16], index: 4, kind: input, shape index: {}]   ;;  %s2987_s2 = inlined_call_operand.vmem [shape: f32[128,16], index: 2, kind: input, shape index: {}]   ;;  %s2988_s5 = inlined_call_operand.vmem [shape: f32[256,1], index: 5, kind: input, shape index: {}]   ;;  %s2989_s3 = inlined_call_operand.vmem [shape: bf16[256,16], index: 3, kind: input, shape index: {}]   ;;  %s2990_s0 = inlined_call_operand.vmem [shape: f32[128,16], index: 0, kind: input, shape index: {}]   ;;  %s2991_s1 = inlined_call_operand.vmem [shape: f32[128,16], index: 1, kind: input, shape index: {}]   ;;  %s2992_s7 = inlined_call_operand.vmem [shape: f32[128,1], index: 7, kind: input, shape index: {}]   ;;  %s2993_s6 = inlined_call_operand.vmem [shape: bf16[128,256], index: 6, kind: input, shape index: {}]   ;;  %s2994_s8 = inlined_call_operand.vmem [shape: bf16[16,128], index: 8, kind: input, shape index: {}]   ;;  %s2995_s9 = inlined_call_operand.vmem [shape: f32[1,16], index: 9, kind: input, shape index: {}]   ;;  %s2996_s10 = inlined_call_operand.vmem [shape: f32[128,16], index: 10, kind: output, shape index: {}]  }
   0x1   :  { %v2175_v0 = vld [vmem:[%s2986_s4] sm:$0xff]   ;;  %2174 = vset.pattern.permute.xlu1 %v2296_v1  ;;  %2173 = vset.pattern.permute.xlu0 %v2296_v1  ;;  %v934_v19 = vld [vmem:[%s2988_s5 + $0x88] sm:$0xff]  ;;  %v935_v23 = vld [vmem:[%s2988_s5 + $0x90] sm:$0xff] }
   0x2   :  { %2026 = vmatprep.mubr.msk.bf16.mxu0 %vm370_vm0, %v2175_v0  ;;  %v933_v17 = vld [vmem:[%s2988_s5 + $0x80] sm:$0xff]  ;;  %v918_v21 = vld [vmem:[%s2988_s5 + $0x8] sm:$0xff]  ;;  %v936_v24 = vld [vmem:[%s2988_s5 + $0x98] sm:$0xff] }
   0x3   :  { %v917_v18 = vld [vmem:[%s2988_s5] sm:$0xff]  ;;  %1031 = vperm.xlu0 %2173, %v933_v17   ;;  %v919_v27 = vld [vmem:[%s2988_s5 + $0x10] sm:$0xff]  ;;  %v920_v28 = vld [vmem:[%s2988_s5 + $0x18] sm:$0xff] }
   0x4   :  { %951 = vperm.xlu1 %2174, %v917_v18   ;;  %v937_v31 = vld [vmem:[%s2988_s5 + $0xa0] sm:$0xff]  ;;  %v938_v32 = vld [vmem:[%s2988_s5 + $0xa8] sm:$0xff]  ;;  %v939_v39 = vld [vmem:[%s2988_s5 + $0xb0] sm:$0xff] }
   0x5   :  { %v921_v35 = vld [vmem:[%s2988_s5 + $0x20] sm:$0xff]  ;;  %v922_v37 = vld [vmem:[%s2988_s5 + $0x28] sm:$0xff]  ;;  %v940_v40 = vld [vmem:[%s2988_s5 + $0xb8] sm:$0xff] }
   0x6   :  { %s1783_s16 = sshll.u32 %s11_s13, 4  ;;  %v923_v46 = vld [vmem:[%s2988_s5 + $0x30] sm:$0xff]  ;;  %v924_v47 = vld [vmem:[%s2988_s5 + $0x38] sm:$0xff]  ;;  %v941_v57 = vld [vmem:[%s2988_s5 + $0xc0] sm:$0xff] }
   0x7   :  { %p74_p0 = scmp.lt.s32.totalorder %s1783_s16, 15  ;;  %1036 = vperm.xlu0 %2173, %v934_v19   ;;  %v942_v58 = vld [vmem:[%s2988_s5 + $0xc8] sm:$0xff]  ;;  %v925_v63 = vld [vmem:[%s2988_s5 + $0x40] sm:$0xff] }
   0x8   :  { %956 = vperm.xlu1 %2174, %v918_v21   ;;  %v926_v0 = vld [vmem:[%s2988_s5 + $0x48] sm:$0xff] }
   0x9   :  { %s2998_s16 = smov (!%p74_p0, %s1783_s16), 15 }
   0xa   :  { %s2356_s17 = sshll.u32 %s2998_s16, 3 }
   0xb   :  { %s2362_s20 = scalar_lea.vmem %s2987_s2, %s2356_s17  ;;  %1041 = vperm.xlu0 %2173, %v935_v23   ;;  %s2475_s11 = scalar_lea.vmem %s2990_s0, %s2356_s17  ;;  %v928_v23 = vld [vmem:[%s2988_s5 + $0x58] sm:$0xff] }
   0xc   :  { %v2365_v2 = vld [vmem:[%s2362_s20] sm:$0xff]  ;;  %v2368_v3 = vld [vmem:[%s2362_s20 + $0x8] sm:$0xff]  ;;  %v2371_v4 = vld [vmem:[%s2362_s20 + $0x10] sm:$0xff]  ;;  %1046 = vperm.xlu1 %2174, %v936_v24   ;;  %s2484_s14 = scalar_lea.vmem %s2991_s1, %s2356_s17  ;;  %s2949_s1 = scalar_lea.vmem %s2996_s10, %s2356_s17 }
   0xd   :  { %v2374_v5 = vld [vmem:[%s2362_s20 + $0x18] sm:$0xff]  ;;  %v218_v6 = vpack.c.bf16 %v2368_v3, %v2365_v2  ;;  %v2384_v9 = vld [vmem:[%s2362_s20 + $0x20] sm:$0xff]  ;;  %v2387_v10 = vld [vmem:[%s2362_s20 + $0x28] sm:$0xff]  ;;  %v162_v44 = vsub.f32 1.0, %v2365_v2  ;;  %v163_v45 = vsub.f32 1.0, %v2368_v3  ;;  %v164_v1 = vsub.f32 1.0, %v2371_v4 }
   0xe   :  { %v219_v7 = vpack.c.bf16 %v2374_v5, %v2371_v4  ;;  %v220_v12 = vpack.c.bf16 %v2387_v10, %v2384_v9  ;;  %v2394_v13 = vld [vmem:[%s2362_s20 + $0x30] sm:$0xff]  ;;  %v2397_v14 = vld [vmem:[%s2362_s20 + $0x38] sm:$0xff]  ;;  %v2413_v20 = vld [vmem:[%s2362_s20 + $0x40] sm:$0xff]  ;;  %v166_v24 = vsub.f32 1.0, %v2384_v9 }
   0xf   :  { %2156 = vmatprep.subr.msk.bf16.mxu0 %vm370_vm0, %v218_v6  ;;  %v420_v8 = vsel %vm370_vm0, %v218_v6, 0  ;;  %v221_v16 = vpack.c.bf16 %v2397_v14, %v2394_v13  ;;  %v2419_v22 = vld [vmem:[%s2362_s20 + $0x48] sm:$0xff]  ;;  %v2438_v29 = vld [vmem:[%s2362_s20 + $0x50] sm:$0xff]  ;;  %v2441_v30 = vld [vmem:[%s2362_s20 + $0x58] sm:$0xff]  ;;  %961 = vperm.xlu0 %2173, %v919_v27  }
  0x10   :  { %2011 = vmatpush3.bf16.xpose.msra.mxu0 %v420_v8  ;;  %v423_v11 = vsel %vm370_vm0, %v219_v7, 0  ;;  %v426_v15 = vsel %vm370_vm0, %v220_v12, 0  ;;  %v222_v26 = vpack.c.bf16 %v2419_v22, %v2413_v20  ;;  %966 = vperm.xlu1 %2174, %v920_v28   ;;  %v223_v34 = vpack.c.bf16 %v2441_v30, %v2438_v29  ;;  %v2456_v36 = vld [vmem:[%s2362_s20 + $0x60] sm:$0xff]  ;;  %v2463_v38 = vld [vmem:[%s2362_s20 + $0x68] sm:$0xff]  ;;  %v2500_v51 = vld [vmem:[%s2362_s20 + $0x70] sm:$0xff] }
  0x11   :  { %2157 = vmatprep.subr.msk.bf16.mxu0 %vm370_vm0, %v219_v7  ;;  %v429_v25 = vsel %vm370_vm0, %v221_v16, 0  ;;  %v224_v42 = vpack.c.bf16 %v2463_v38, %v2456_v36  ;;  %v98_v43 = vld [vmem:[%s2475_s11] sm:$0xff]  ;;  %v99_v48 = vld [vmem:[%s2475_s11 + $0x8] sm:$0xff]  ;;  %v2503_v52 = vld [vmem:[%s2362_s20 + $0x78] sm:$0xff] }
  0x12   :  { %v432_v33 = vsel %vm370_vm0, %v222_v26, 0  ;;  %v435_v41 = vsel %vm370_vm0, %v223_v34, 0  ;;  %v114_v49 = vld [vmem:[%s2484_s14] sm:$0xff]  ;;  %v115_v50 = vld [vmem:[%s2484_s14 + $0x8] sm:$0xff]  ;;  %v146_v53 = vmul.f32 %v2365_v2, %v98_v43  ;;  %v147_v54 = vmul.f32 %v2368_v3, %v99_v48  ;;  %v100_v3 = vld [vmem:[%s2475_s11 + $0x10] sm:$0xff] }
  0x13   :  { %1051 = vperm.xlu0 %2173, %v937_v31   ;;  %v178_v55 = vmul.f32 %v162_v44, %v114_v49  ;;  %v179_v56 = vmul.f32 %v163_v45, %v115_v50  ;;  %v438_v59 = vsel %vm370_vm0, %v224_v42, 0  ;;  %v225_v60 = vpack.c.bf16 %v2503_v52, %v2500_v51  ;;  %v101_v6 = vld [vmem:[%s2475_s11 + $0x18] sm:$0xff]  ;;  %v116_v7 = vld [vmem:[%s2484_s14 + $0x10] sm:$0xff]  ;;  %v102_v27 = vld [vmem:[%s2475_s11 + $0x20] sm:$0xff] }
  0x14   :  { %1056 = vperm.xlu1 %2174, %v938_v32   ;;  %v165_v2 = vsub.f32 1.0, %v2374_v5  ;;  %v117_v8 = vld [vmem:[%s2484_s14 + $0x18] sm:$0xff]  ;;  %v149_v18 = vmul.f32 %v2374_v5, %v101_v6  ;;  %v180_v19 = vmul.f32 %v164_v1, %v116_v7  ;;  %v103_v28 = vld [vmem:[%s2475_s11 + $0x28] sm:$0xff]  ;;  %v118_v31 = vld [vmem:[%s2484_s14 + $0x20] sm:$0xff]  ;;  %v169_v45 = vsub.f32 1.0, %v2397_v14 }
  0x15   :  { %v194_v61 = vadd.f32 %v178_v55, %v146_v53  ;;  %v195_v62 = vadd.f32 %v179_v56, %v147_v54  ;;  %v441_v17 = vsel %vm370_vm0, %v225_v60, 0  ;;  %v119_v32 = vld [vmem:[%s2484_s14 + $0x28] sm:$0xff]  ;;  %v104_v48 = vld [vmem:[%s2475_s11 + $0x30] sm:$0xff]  ;;  %v105_v49 = vld [vmem:[%s2475_s11 + $0x38] sm:$0xff]  ;;  %v171_v1 = vsub.f32 1.0, %v2419_v22 }
  0x16   :  { %v181_v21 = vmul.f32 %v165_v2, %v117_v8  ;;  %v946_v44 = vld [vmem:[%s2988_s5 + $0xe8] sm:$0xff]  ;;  %v120_v50 = vld [vmem:[%s2484_s14 + $0x30] sm:$0xff]  ;;  %v121_v53 = vld [vmem:[%s2484_s14 + $0x38] sm:$0xff] }
  0x17   :  { %971 = vperm.xlu0 %2173, %v921_v35   ;;  %v2177_v35 = vld [vmem:[%s2986_s4 + $0x10] sm:$0xff]   ;;  %v930_v54 = vld [vmem:[%s2988_s5 + $0x68] sm:$0xff]  ;;  %v2178_v55 = vld [vmem:[%s2986_s4 + $0x18] sm:$0xff]  }
  0x18   :  { %2013 = vmatpush3.bf16.xpose.msra.mxu0 %v423_v11  ;;  %976 = vperm.xlu1 %2174, %v922_v37   ;;  %v210_v11 = vpack.c.bf16 %v195_v62, %v194_v61  ;;  %v150_v37 = vmul.f32 %v2384_v9, %v102_v27  ;;  %v929_v9 = vld [vmem:[%s2988_s5 + $0x60] sm:$0xff]  ;;  %v107_v7 = vld [vmem:[%s2475_s11 + $0x48] sm:$0xff] }
  0x19   :  { %2158 = vmatprep.subr.msk.bf16.mxu0 %vm370_vm0, %v220_v12  ;;  %v148_v12 = vmul.f32 %v2371_v4, %v100_v3  ;;  %v927_v4 = vld [vmem:[%s2988_s5 + $0x50] sm:$0xff]  ;;  %v2179_v56 = vld [vmem:[%s2986_s4 + $0x20] sm:$0xff]  }
  0x1a   :  { %v106_v6 = vld [vmem:[%s2475_s11 + $0x40] sm:$0xff] }
  0x1b   :  { %1061 = vperm.xlu0 %2173, %v939_v39   ;;  %v196_v5 = vadd.f32 %v180_v19, %v148_v12  ;;  %v945_v39 = vld [vmem:[%s2988_s5 + $0xe0] sm:$0xff]  ;;  %v932_v12 = vld [vmem:[%s2988_s5 + $0x78] sm:$0xff] }
  0x1c   :  { %1066 = vperm.xlu1 %2174, %v940_v40   ;;  %v122_v8 = vld [vmem:[%s2484_s14 + $0x40] sm:$0xff] }
  0x1d   :  { %v1205_v19 = vld [vmem:[%s2992_s7] sm:$0xff] }
  0x1f   :  { %981 = vperm.xlu0 %2173, %v923_v46  }
  0x20   :  { %2015 = vmatpush3.bf16.xpose.msra.mxu0 %v426_v15  ;;  %986 = vperm.xlu1 %2174, %v924_v47   ;;  %v943_v15 = vld [vmem:[%s2988_s5 + $0xd0] sm:$0xff] }
  0x21   :  { %2159 = vmatprep.subr.msk.bf16.mxu0 %vm370_vm0, %v221_v16  ;;  %v944_v16 = vld [vmem:[%s2988_s5 + $0xd8] sm:$0xff] }
  0x23   :  { %1071 = vperm.xlu0 %2173, %v941_v57   ;;  %v152_v57 = vmul.f32 %v2394_v13, %v104_v48  ;;  %v110_v48 = vld [vmem:[%s2475_s11 + $0x60] sm:$0xff] }
  0x24   :  { %1076 = vperm.xlu1 %2174, %v942_v58   ;;  %v153_v58 = vmul.f32 %v2397_v14, %v105_v49  ;;  %v931_v14 = vld [vmem:[%s2988_s5 + $0x70] sm:$0xff]  ;;  %v111_v49 = vld [vmem:[%s2475_s11 + $0x68] sm:$0xff] }
  0x27   :  { %991 = vperm.xlu0 %2173, %v925_v63   ;;  %v185_v63 = vmul.f32 %v169_v45, %v121_v53  ;;  %v175_v45 = vsub.f32 1.0, %v2463_v38  ;;  %v127_v53 = vld [vmem:[%s2484_s14 + $0x68] sm:$0xff] }
  0x28   :  { %2017 = vmatpush3.bf16.xpose.msra.mxu0 %v429_v25  ;;  %996 = vperm.xlu1 %2174, %v926_v0   ;;  %v167_v25 = vsub.f32 1.0, %v2387_v10  ;;  %v170_v0 = vsub.f32 1.0, %v2413_v20 }
  0x29   :  { %2160 = vmatprep.subr.msk.bf16.mxu0 %vm370_vm0, %v222_v26  ;;  %v197_v26 = vadd.f32 %v181_v21, %v149_v18  ;;  %v201_v3 = vadd.f32 %v185_v63, %v153_v58  ;;  %v155_v18 = vmul.f32 %v2419_v22, %v107_v7  ;;  %v1207_v22 = vld [vmem:[%s2992_s7 + $0x10] sm:$0xff]  ;;  %v159_v58 = vmul.f32 %v2463_v38, %v111_v49  ;;  %v129_v7 = vld [vmem:[%s2484_s14 + $0x78] sm:$0xff]  ;;  %v2209_v49 = vld [vmem:[%s2993_s6 + $0x4] ss:$8 sps:$4 sm:$0xff]  }
  0x2a   :  { %v183_v43 = vmul.f32 %v167_v25, %v119_v32  ;;  %v172_v25 = vsub.f32 1.0, %v2438_v29  ;;  %v124_v32 = vld [vmem:[%s2484_s14 + $0x50] sm:$0xff]  ;;  %v191_v63 = vmul.f32 %v175_v45, %v127_v53  ;;  %1413 = vmatprep.mubr.bf16.mxu1 %v2209_v49 }
  0x2b   :  { %1081 = vperm.xlu0 %2173, %v943_v15   ;;  %v211_v40 = vpack.c.bf16 %v197_v26, %v196_v5  ;;  %v2180_v15 = vld [vmem:[%s2986_s4 + $0x28] sm:$0xff]   ;;  %v173_v5 = vsub.f32 1.0, %v2441_v30  ;;  %v1215_v38 = vld [vmem:[%s2992_s7 + $0x50] sm:$0xff] }
  0x2c   :  { %1086 = vperm.xlu1 %2174, %v944_v16   ;;  %v2181_v16 = vld [vmem:[%s2986_s4 + $0x30] sm:$0xff]  }
  0x2f   :  { %1001 = vperm.xlu0 %2173, %v927_v4  }
  0x30   :  { %2019 = vmatpush3.bf16.xpose.msra.mxu0 %v432_v33  ;;  %v2176_v33 = vld [vmem:[%s2986_s4 + $0x8] sm:$0xff]   ;;  %1006 = vperm.xlu1 %2174, %v928_v23   ;;  %v186_v23 = vmul.f32 %v170_v0, %v122_v8  ;;  %v1216_v8 = vld [vmem:[%s2992_s7 + $0x58] sm:$0xff] }
  0x31   :  { %2161 = vmatprep.subr.msk.bf16.mxu0 %vm370_vm0, %v223_v34  ;;  %v733_v34 = vsel %vm370_vm0, %v210_v11, 0 }
  0x33   :  { %1091 = vperm.xlu0 %2173, %v945_v39  }
  0x34   :  { %1096 = vperm.xlu1 %2174, %v946_v44   ;;  %v188_v44 = vmul.f32 %v172_v25, %v124_v32  ;;  %v2189_v25 = vld [vmem:[%s2986_s4 + $0x70] sm:$0xff]   ;;  %v2192_v32 = vld [vmem:[%s2989_s3 + $0x8] sm:$0xff]  }
  0x37   :  { %1011 = vperm.xlu0 %2173, %v929_v9  }
  0x38   :  { %2021 = vmatpush3.bf16.xpose.msra.mxu0 %v435_v41  ;;  %v151_v41 = vmul.f32 %v2387_v10, %v103_v28  ;;  %v168_v10 = vsub.f32 1.0, %v2394_v13  ;;  %1016 = vperm.xlu1 %2174, %v930_v54   ;;  %v948_v13 = vld [vmem:[%s2988_s5 + $0xf8] sm:$0xff]  ;;  %v108_v28 = vld [vmem:[%s2475_s11 + $0x50] sm:$0xff] }
  0x39   :  { %2162 = vmatprep.subr.msk.bf16.mxu0 %vm370_vm0, %v224_v42  ;;  %v182_v42 = vmul.f32 %v166_v24, %v118_v31  ;;  %v109_v31 = vld [vmem:[%s2475_s11 + $0x58] sm:$0xff]  ;;  %v156_v39 = vmul.f32 %v2438_v29, %v108_v28  ;;  %v1210_v29 = vld [vmem:[%s2992_s7 + $0x28] sm:$0xff]  ;;  %v2191_v28 = vld [vmem:[%s2989_s3] sm:$0xff]  }
  0x3a   :  { %v199_v47 = vadd.f32 %v183_v43, %v151_v41  ;;  %v184_v62 = vmul.f32 %v168_v10, %v120_v50  ;;  %v1209_v41 = vld [vmem:[%s2992_s7 + $0x20] sm:$0xff]  ;;  %v174_v10 = vsub.f32 1.0, %v2456_v36  ;;  %v1212_v54 = vld [vmem:[%s2992_s7 + $0x38] sm:$0xff] }
  0x3b   :  { %v198_v46 = vadd.f32 %v182_v42, %v150_v37  ;;  %v2183_v37 = vld [vmem:[%s2986_s4 + $0x40] sm:$0xff]  }
  0x3c   :  { %v200_v2 = vadd.f32 %v184_v62, %v152_v57  ;;  %1106 = vperm.xlu1 %2174, %v948_v13   ;;  %v126_v50 = vld [vmem:[%s2484_s14 + $0x60] sm:$0xff]  ;;  %v158_v57 = vmul.f32 %v2456_v36, %v110_v48  ;;  %v1214_v36 = vld [vmem:[%s2992_s7 + $0x48] sm:$0xff]  ;;  %v176_v13 = vsub.f32 1.0, %v2500_v51 }
  0x3d   :  { %v212_v61 = vpack.c.bf16 %v199_v47, %v198_v46  ;;  %v204_v46 = vadd.f32 %v188_v44, %v156_v39  ;;  %v190_v62 = vmul.f32 %v174_v10, %v126_v50  ;;  %v2197_v39 = vld [vmem:[%s2989_s3 + $0x30] sm:$0xff]   ;;  %v2202_v44 = vld [vmem:[%s2989_s3 + $0x58] sm:$0xff]  }
  0x3e   :  { %v213_v4 = vpack.c.bf16 %v201_v3, %v200_v2  ;;  %v112_v2 = vld [vmem:[%s2475_s11 + $0x70] sm:$0xff]  ;;  %v113_v3 = vld [vmem:[%s2475_s11 + $0x78] sm:$0xff] }
  0x3f   :  { %v739_v21 = vsel %vm370_vm0, %v212_v61, 0  ;;  %v206_v0 = vadd.f32 %v190_v62, %v158_v57  ;;  %v2206_v10 = vld [vmem:[%s2989_s3 + $0x78] sm:$0xff]  }
  0x40   :  { %2023 = vmatpush3.bf16.xpose.msra.mxu0 %v438_v59  ;;  %v947_v59 = vld [vmem:[%s2988_s5 + $0xf0] sm:$0xff]  ;;  %1026 = vperm.xlu1 %2174, %v932_v12   ;;  %v742_v42 = vsel %vm370_vm0, %v213_v4, 0  ;;  %v2187_v12 = vld [vmem:[%s2986_s4 + $0x60] sm:$0xff]  }
  0x41   :  { %2163 = vmatprep.subr.msk.bf16.mxu0 %vm370_vm0, %v225_v60  ;;  %v736_v60 = vsel %vm370_vm0, %v211_v40, 0  ;;  %1101 = vperm.xlu0 %2173, %v947_v59   ;;  %v1213_v59 = vld [vmem:[%s2992_s7 + $0x40] sm:$0xff] }
  0x45   :  { %1021 = vperm.xlu0 %2173, %v931_v14   ;;  %v177_v14 = vsub.f32 1.0, %v2503_v52 }
  0x48   :  { %2025 = vmatpush3.bf16.xpose.msra.mxu0 %v441_v17  ;;  %v154_v17 = vmul.f32 %v2413_v20, %v106_v6  ;;  %v1206_v20 = vld [vmem:[%s2992_s7 + $0x8] sm:$0xff]  ;;  %v128_v6 = vld [vmem:[%s2484_s14 + $0x70] sm:$0xff] }
  0x49   :  { %2164 = vmatprep.subr.msk.bf16.mxu0 %vm370_vm0, %v210_v11  ;;  %v123_v11 = vld [vmem:[%s2484_s14 + $0x48] sm:$0xff]  ;;  %1223 = vperm.xlu0 %2173, %v1205_v19  }
  0x4a   :  { %v187_v24 = vmul.f32 %v171_v1, %v123_v11  ;;  %v202_v26 = vadd.f32 %v186_v23, %v154_v17  ;;  %1228 = vperm.xlu1 %2174, %v1206_v20   ;;  %v207_v1 = vadd.f32 %v191_v63, %v159_v58  ;;  %v2186_v11 = vld [vmem:[%s2986_s4 + $0x58] sm:$0xff]   ;;  %v1217_v17 = vld [vmem:[%s2992_s7 + $0x60] sm:$0xff]  ;;  %v1218_v23 = vld [vmem:[%s2992_s7 + $0x68] sm:$0xff] }
  0x4b   :  { %v1220_v20 = vld [vmem:[%s2992_s7 + $0x78] sm:$0xff] }
  0x4c   :  { %v203_v27 = vadd.f32 %v187_v24, %v155_v18  ;;  %v216_v19 = vpack.c.bf16 %v207_v1, %v206_v0 }
  0x4d   :  { %1233 = vperm.xlu0 %2173, %v1207_v22   ;;  %v2188_v22 = vld [vmem:[%s2986_s4 + $0x68] sm:$0xff]  }
  0x4e   :  { %v214_v43 = vpack.c.bf16 %v203_v27, %v202_v26  ;;  %v2190_v27 = vld [vmem:[%s2986_s4 + $0x78] sm:$0xff]  }
  0x4f   :  { %2027 = vmatmul.mubr.msk.bf16.vlgmr.msra.gmra.mrb[0].mxu0 %vm370_vm0, %v2176_v33  ;;  %v125_v33 = vld [vmem:[%s2484_s14 + $0x58] sm:$0xff] }
  0x50   :  { %2059 = vmatpush3.bf16.xpose.msra.mxu0 %v733_v34  ;;  %2030 = vmatprep.mubr.msk.bf16.mxu0 %vm370_vm0, %v2177_v35  ;;  %v1208_v34 = vld [vmem:[%s2992_s7 + $0x18] sm:$0xff]  ;;  %v189_v9 = vmul.f32 %v173_v5, %v125_v33  ;;  %v751_v5 = vsel %vm370_vm0, %v216_v19, 0  ;;  %v2193_v33 = vld [vmem:[%s2989_s3 + $0x10] sm:$0xff]  }
  0x51   :  { %2165 = vmatprep.subr.msk.bf16.mxu0 %vm370_vm0, %v211_v40  ;;  %v2182_v35 = vld [vmem:[%s2986_s4 + $0x38] sm:$0xff]   ;;  %v157_v40 = vmul.f32 %v2441_v30, %v109_v31  ;;  %1238 = vperm.xlu1 %2174, %v1208_v34   ;;  %v1211_v30 = vld [vmem:[%s2992_s7 + $0x30] sm:$0xff] }
  0x52   :  { %1243 = vperm.xlu0 %2173, %v1209_v41   ;;  %v2194_v34 = vld [vmem:[%s2989_s3 + $0x18] sm:$0xff]   ;;  %v2199_v41 = vld [vmem:[%s2989_s3 + $0x40] sm:$0xff]  }
  0x53   :  { %v205_v47 = vadd.f32 %v189_v9, %v157_v40  ;;  %v2198_v40 = vld [vmem:[%s2989_s3 + $0x38] sm:$0xff]   ;;  %v2203_v9 = vld [vmem:[%s2989_s3 + $0x60] sm:$0xff]  }
  0x55   :  { %1248 = vperm.xlu1 %2174, %v1210_v29   ;;  %v2204_v29 = vld [vmem:[%s2989_s3 + $0x68] sm:$0xff]  }
  0x56   :  { %1253 = vperm.xlu0 %2173, %v1211_v30   ;;  %v2205_v30 = vld [vmem:[%s2989_s3 + $0x70] sm:$0xff]  }
  0x57   :  { %2031 = vmatmul.mubr.msk.bf16.gmra.mrb[4].mxu0 %vm370_vm0, %v2178_v55  ;;  %v2184_v55 = vld [vmem:[%s2986_s4 + $0x48] sm:$0xff]  }
  0x58   :  { %2061 = vmatpush3.bf16.xpose.msra.mxu0 %v736_v60  ;;  %2034 = vmatprep.mubr.msk.bf16.mxu0 %vm370_vm0, %v2179_v56  ;;  %v2185_v56 = vld [vmem:[%s2986_s4 + $0x50] sm:$0xff]   ;;  %v745_v60 = vsel %vm370_vm0, %v214_v43, 0 }
  0x59   :  { %2166 = vmatprep.subr.msk.bf16.mxu0 %vm370_vm0, %v212_v61  ;;  %v215_v61 = vpack.c.bf16 %v205_v47, %v204_v46  ;;  %1258 = vperm.xlu1 %2174, %v1212_v54  }
  0x5a   :  { %1263 = vperm.xlu0 %2173, %v1213_v59  }
  0x5b   :  { %v748_v18 = vsel %vm370_vm0, %v215_v61, 0 }
  0x5d   :  { %1268 = vperm.xlu1 %2174, %v1214_v36  }
  0x5e   :  { %1273 = vperm.xlu0 %2173, %v1215_v38  }
  0x5f   :  { %2035 = vmatmul.mubr.msk.bf16.gmra.mrb[8].mxu0 %vm370_vm0, %v2180_v15  ;;  %v160_v15 = vmul.f32 %v2500_v51, %v112_v2  ;;  %v1219_v51 = vld [vmem:[%s2992_s7 + $0x70] sm:$0xff] }
  0x60   :  { %2063 = vmatpush3.bf16.xpose.msra.mxu0 %v739_v21  ;;  %2038 = vmatprep.mubr.msk.bf16.mxu0 %vm370_vm0, %v2181_v16  ;;  %v161_v16 = vmul.f32 %v2503_v52, %v113_v3  ;;  %v192_v21 = vmul.f32 %v176_v13, %v128_v6 }
  0x61   :  { %2167 = vmatprep.subr.msk.bf16.mxu0 %vm370_vm0, %v213_v4  ;;  %v193_v4 = vmul.f32 %v177_v14, %v129_v7  ;;  %1278 = vperm.xlu1 %2174, %v1216_v8  }
  0x62   :  { %1283 = vperm.xlu0 %2173, %v1217_v17   ;;  %v208_v52 = vadd.f32 %v192_v21, %v160_v15 }
  0x63   :  { %v209_v24 = vadd.f32 %v193_v4, %v161_v16 }
  0x65   :  { %1288 = vperm.xlu1 %2174, %v1218_v23   ;;  %v217_v26 = vpack.c.bf16 %v209_v24, %v208_v52 }
  0x66   :  { %1293 = vperm.xlu0 %2173, %v1219_v51  }
  0x67   :  { %2039 = vmatmul.mubr.msk.bf16.gmra.mrb[12].mxu0 %vm370_vm0, %v2182_v35  ;;  %v754_v31 = vsel %vm370_vm0, %v217_v26, 0  ;;  %v2195_v35 = vld [vmem:[%s2989_s3 + $0x20] sm:$0xff]  }
  0x68   :  { %2065 = vmatpush3.bf16.xpose.msra.mxu0 %v742_v42  ;;  %2042 = vmatprep.mubr.msk.bf16.mxu0 %vm370_vm0, %v2183_v37  ;;  %v2196_v37 = vld [vmem:[%s2989_s3 + $0x28] sm:$0xff]  }
  0x69   :  { %2168 = vmatprep.subr.msk.bf16.mxu0 %vm370_vm0, %v214_v43  ;;  %1298 = vperm.xlu1 %2174, %v1220_v20   ;;  %v2200_v42 = vld [vmem:[%s2989_s3 + $0x48] sm:$0xff]   ;;  %v2201_v43 = vld [vmem:[%s2989_s3 + $0x50] sm:$0xff]  }
  0x6f   :  { %2043 = vmatmul.mubr.msk.bf16.gmra.mrb[16].mxu0 %vm370_vm0, %v2184_v55 }
  0x70   :  { %2067 = vmatpush3.bf16.xpose.msra.mxu0 %v745_v60  ;;  %2046 = vmatprep.mubr.msk.bf16.mxu0 %vm370_vm0, %v2185_v56 }
  0x71   :  { %2169 = vmatprep.subr.msk.bf16.mxu0 %vm370_vm0, %v215_v61 }
  0x77   :  { %2047 = vmatmul.mubr.msk.bf16.gmra.mrb[20].mxu0 %vm370_vm0, %v2186_v11 }
  0x78   :  { %2069 = vmatpush3.bf16.xpose.msra.mxu0 %v748_v18  ;;  %2050 = vmatprep.mubr.msk.bf16.mxu0 %vm370_vm0, %v2187_v12 }
  0x79   :  { %2170 = vmatprep.subr.msk.bf16.mxu0 %vm370_vm0, %v216_v19 }
  0x7f   :  { %2051 = vmatmul.mubr.msk.bf16.gmra.mrb[24].mxu0 %vm370_vm0, %v2188_v22 }
  0x80   :  { %2071 = vmatpush3.bf16.xpose.msra.mxu0 %v751_v5  ;;  %2054 = vmatprep.mubr.msk.bf16.mxu0 %vm370_vm0, %v2189_v25 }
  0x81   :  { %2171 = vmatprep.subr.msk.bf16.mxu0 %vm370_vm0, %v217_v26 }
  0x82   :  { %v2804_v45 = vpop.permute.xlu0 %1031 }
  0x83   :  { %v952_v46 = vpop.permute.xlu1 %951 }
  0x86   :  { %v2806_v47 = vpop.permute.xlu0 %1036 }
  0x87   :  { %2055 = vmatmul.mubr.msk.bf16.gmra.mrb[28].mxu0 %vm370_vm0, %v2190_v27  ;;  %v957_v48 = vpop.permute.xlu1 %956 }
  0x88   :  { %2073 = vmatpush3.bf16.xpose.msra.mxu0 %v754_v31  ;;  %2074 = vmatprep.mubr.msk.bf16.mxu0 %vm370_vm0, %v2191_v28 }
  0x8a   :  { %v2811_v50 = vpop.permute.xlu0 %1041 }
  0x8b   :  { %v2813_v53 = vpop.permute.xlu1 %1046 }
  0x8e   :  { %v962_v54 = vpop.permute.xlu0 %961 }
  0x8f   :  { %2075 = vmatmul.mubr.msk.bf16.vlgmr.msra.gmra.mrb[0].mxu0 %vm370_vm0, %v2192_v32  ;;  %v967_v55 = vpop.permute.xlu1 %966 }
  0x90   :  { %2078 = vmatprep.mubr.msk.bf16.mxu0 %vm370_vm0, %v2193_v33 }
  0x92   :  { %v2815_v56 = vpop.permute.xlu0 %1051 }
  0x93   :  { %v2817_v57 = vpop.permute.xlu1 %1056 }
  0x96   :  { %v972_v58 = vpop.permute.xlu0 %971 }
  0x97   :  { %2079 = vmatmul.mubr.msk.bf16.gmra.mrb[4].mxu0 %vm370_vm0, %v2194_v34  ;;  %v977_v59 = vpop.permute.xlu1 %976 }
  0x98   :  { %2082 = vmatprep.mubr.msk.bf16.mxu0 %vm370_vm0, %v2195_v35 }
  0x9a   :  { %v2819_v60 = vpop.permute.xlu0 %1061 }
  0x9b   :  { %v2821_v61 = vpop.permute.xlu1 %1066 }
  0x9e   :  { %v982_v62 = vpop.permute.xlu0 %981 }
  0x9f   :  { %2083 = vmatmul.mubr.msk.bf16.gmra.mrb[8].mxu0 %vm370_vm0, %v2196_v37  ;;  %v987_v63 = vpop.permute.xlu1 %986 }
  0xa0   :  { %2086 = vmatprep.mubr.msk.bf16.mxu0 %vm370_vm0, %v2197_v39 }
  0xa2   :  { %v2823_v36 = vpop.permute.xlu0 %1071 }
  0xa3   :  { %v2825_v38 = vpop.permute.xlu1 %1076 }
  0xa6   :  { %v992_v13 = vpop.permute.xlu0 %991 }
  0xa7   :  { %2087 = vmatmul.mubr.msk.bf16.gmra.mrb[12].mxu0 %vm370_vm0, %v2198_v40  ;;  %v997_v14 = vpop.permute.xlu1 %996 }
  0xa8   :  { %2090 = vmatprep.mubr.msk.bf16.mxu0 %vm370_vm0, %v2199_v41 }
  0xaa   :  { %v2827_v0 = vpop.permute.xlu0 %1081 }
  0xab   :  { %v2829_v1 = vpop.permute.xlu1 %1086 }
  0xae   :  { %v1002_v2 = vpop.permute.xlu0 %1001 }
  0xaf   :  { %2091 = vmatmul.mubr.msk.bf16.gmra.mrb[16].mxu0 %vm370_vm0, %v2200_v42  ;;  %v1007_v8 = vpop.permute.xlu1 %1006 }
  0xb0   :  { %2094 = vmatprep.mubr.msk.bf16.mxu0 %vm370_vm0, %v2201_v43 }
  0xb2   :  { %v2831_v21 = vpop.permute.xlu0 %1091 }
  0xb3   :  { %v2835_v52 = vpop.permute.xlu1 %1096 }
  0xb6   :  { %v1012_v31 = vpop.permute.xlu0 %1011 }
  0xb7   :  { %2095 = vmatmul.mubr.msk.bf16.gmra.mrb[20].mxu0 %vm370_vm0, %v2202_v44  ;;  %v1017_v35 = vpop.permute.xlu1 %1016 }
  0xb8   :  { %2098 = vmatprep.mubr.msk.bf16.mxu0 %vm370_vm0, %v2203_v9 }
  0xbf   :  { %2099 = vmatmul.mubr.msk.bf16.gmra.mrb[24].mxu0 %vm370_vm0, %v2204_v29 }
  0xc0   :  { %2102 = vmatprep.mubr.msk.bf16.mxu0 %vm370_vm0, %v2205_v30  ;;  %v2843_v9 = vpop.permute.xlu0 %1101 }
  0xc7   :  { %2103 = vmatmul.mubr.msk.bf16.gmra.mrb[28].mxu0 %vm370_vm0, %v2206_v10 }
 0x162   :  { %v2076_v3 = vpop.f32.mrb[0].mxu0 }
 0x163   :  { %v1111_v6 = vadd.f32 %v2076_v3, %v962_v54  ;;  %v790_v7 = vpop.f32.mrb[1].mxu0 }
 0x164   :  { %v1109_v11 = vadd.f32 %v952_v46, %v790_v7  ;;  %v2077_v12 = vpop.f32.mrb[2].mxu0 }
 0x165   :  { %v1112_v15 = vadd.f32 %v2077_v12, %v967_v55  ;;  %v793_v16 = vpop.f32.mrb[3].mxu0  ;;  %v1143_v18 = vmax.f32 %v1111_v6, 0.0 }
 0x166   :  { %v1110_v17 = vadd.f32 %v957_v48, %v793_v16  ;;  %v1141_v4 = vmax.f32 %v1109_v11, 0.0  ;;  %v2845_v48 = vpop.permute.xlu1 %1106 }
 0x167   :  { %v1144_v19 = vmax.f32 %v1112_v15, 0.0 }
 0x168   :  { %v1142_v23 = vmax.f32 %v1110_v17, 0.0 }
 0x169   :  { %v2833_v51 = vpack.c.bf16 %v1144_v19, %v1143_v18 }
 0x16a   :  { %v2080_v24 = vpop.f32.mrb[4].mxu0  ;;  %v2837_v20 = vpack.c.bf16 %v1142_v23, %v1141_v4  ;;  %v1027_v11 = vpop.permute.xlu1 %1026 }
 0x16b   :  { %v1115_v22 = vadd.f32 %v2080_v24, %v982_v62  ;;  %v806_v25 = vpop.f32.mrb[5].mxu0 }
 0x16c   :  { %v1113_v5 = vadd.f32 %v972_v58, %v806_v25  ;;  %v2081_v26 = vpop.f32.mrb[6].mxu0 }
 0x16d   :  { %v1116_v27 = vadd.f32 %v2081_v26, %v987_v63  ;;  %v809_v28 = vpop.f32.mrb[7].mxu0  ;;  %v1147_v33 = vmax.f32 %v1115_v22, 0.0  ;;  %v1022_v63 = vpop.permute.xlu0 %1021 }
 0x16e   :  { %v1114_v32 = vadd.f32 %v977_v59, %v809_v28  ;;  %v1145_v37 = vmax.f32 %v1113_v5, 0.0 }
 0x16f   :  { %v1148_v34 = vmax.f32 %v1116_v27, 0.0 }
 0x170   :  { %v1146_v39 = vmax.f32 %v1114_v32, 0.0 }
 0x171   :  { %v2839_v40 = vpack.c.bf16 %v1148_v34, %v1147_v33 }
 0x172   :  { %v2841_v41 = vpack.c.bf16 %v1146_v39, %v1145_v37  ;;  %v2084_v42 = vpop.f32.mrb[8].mxu0 }
 0x173   :  { %v1119_v43 = vadd.f32 %v2084_v42, %v1002_v2  ;;  %v822_v44 = vpop.f32.mrb[9].mxu0 }
 0x174   :  { %v1117_v29 = vadd.f32 %v992_v13, %v822_v44  ;;  %v2085_v30 = vpop.f32.mrb[10].mxu0 }
 0x175   :  { %v1120_v10 = vadd.f32 %v2085_v30, %v1007_v8  ;;  %v825_v46 = vpop.f32.mrb[11].mxu0  ;;  %v1151_v54 = vmax.f32 %v1119_v43, 0.0 }
 0x176   :  { %v1118_v49 = vadd.f32 %v997_v14, %v825_v46  ;;  %v1149_v58 = vmax.f32 %v1117_v29, 0.0 }
 0x177   :  { %v1152_v55 = vmax.f32 %v1120_v10, 0.0 }
 0x178   :  { %v1150_v59 = vmax.f32 %v1118_v49, 0.0 }
 0x179   :  { %v2847_v62 = vpack.c.bf16 %v1152_v55, %v1151_v54 }
 0x17a   :  { %v2849_v3 = vpack.c.bf16 %v1150_v59, %v1149_v58  ;;  %v2088_v2 = vpop.f32.mrb[12].mxu0 }
 0x17b   :  { %v1123_v6 = vadd.f32 %v2088_v2, %v1022_v63  ;;  %v838_v7 = vpop.f32.mrb[13].mxu0 }
 0x17c   :  { %v1121_v13 = vadd.f32 %v1012_v31, %v838_v7  ;;  %v2089_v12 = vpop.f32.mrb[14].mxu0 }
 0x17d   :  { %v1124_v8 = vadd.f32 %v2089_v12, %v1027_v11  ;;  %v841_v15 = vpop.f32.mrb[15].mxu0  ;;  %v1155_v17 = vmax.f32 %v1123_v6, 0.0 }
 0x17e   :  { %v1122_v16 = vadd.f32 %v1017_v35, %v841_v15  ;;  %v1153_v18 = vmax.f32 %v1121_v13, 0.0 }
 0x17f   :  { %v1156_v14 = vmax.f32 %v1124_v8, 0.0 }
 0x180   :  { %v1154_v19 = vmax.f32 %v1122_v16, 0.0 }
 0x181   :  { %v2851_v4 = vpack.c.bf16 %v1156_v14, %v1155_v17 }
 0x182   :  { %v2853_v23 = vpack.c.bf16 %v1154_v19, %v1153_v18  ;;  %v2092_v24 = vpop.f32.mrb[16].mxu0  ;;  %v2216_v19 = vld [vmem:[%s2993_s6 + $0x34] ss:$8 sps:$4 sm:$0xff]  }
 0x183   :  { %v1127_v22 = vadd.f32 %v2092_v24, %v2811_v50  ;;  %v854_v25 = vpop.f32.mrb[17].mxu0  ;;  %v2221_v24 = vld [vmem:[%s2993_s6 + $0x40] ss:$8 sps:$4 sm:$0xff]  }
 0x184   :  { %v1125_v5 = vadd.f32 %v2804_v45, %v854_v25  ;;  %v2093_v26 = vpop.f32.mrb[18].mxu0  ;;  %v2224_v25 = vld [vmem:[%s2993_s6 + $0x50] ss:$8 sps:$4 sm:$0xff]  }
 0x185   :  { %v1128_v27 = vadd.f32 %v2093_v26, %v2813_v53  ;;  %v857_v28 = vpop.f32.mrb[19].mxu0  ;;  %v1159_v32 = vmax.f32 %v1127_v22, 0.0  ;;  %v2222_v22 = vld [vmem:[%s2993_s6 + $0x54] ss:$8 sps:$4 sm:$0xff]   ;;  %v2227_v26 = vld [vmem:[%s2993_s6 + $0x60] ss:$8 sps:$4 sm:$0xff]  }
 0x186   :  { %v1126_v31 = vadd.f32 %v2806_v47, %v857_v28  ;;  %v1157_v34 = vmax.f32 %v1125_v5, 0.0  ;;  %v2225_v5 = vld [vmem:[%s2993_s6 + $0x64] ss:$8 sps:$4 sm:$0xff]   ;;  %v2230_v28 = vld [vmem:[%s2993_s6 + $0x70] ss:$8 sps:$4 sm:$0xff]  }
 0x187   :  { %v1160_v33 = vmax.f32 %v1128_v27, 0.0  ;;  %v2228_v27 = vld [vmem:[%s2993_s6 + $0x74] ss:$8 sps:$4 sm:$0xff]  }
 0x188   :  { %v1158_v35 = vmax.f32 %v1126_v31, 0.0  ;;  %v2231_v31 = vld [vmem:[%s2994_s8] sm:$0xff]  }
 0x189   :  { %v1182_v37 = vpack.c.bf16 %v1160_v33, %v1159_v32 }
 0x18a   :  { %v2096_v39 = vpop.f32.mrb[20].mxu0  ;;  %v1181_v42 = vpack.c.bf16 %v1158_v35, %v1157_v34 }
 0x18b   :  { %v1131_v43 = vadd.f32 %v2096_v39, %v2819_v60  ;;  %v870_v44 = vpop.f32.mrb[21].mxu0 }
 0x18c   :  { %v1129_v50 = vadd.f32 %v2815_v56, %v870_v44  ;;  %v2097_v29 = vpop.f32.mrb[22].mxu0  ;;  %1937 = vmatprep.subr.bf16.mxu1 %v1181_v42  ;;  %v1229_v44 = vpop.permute.xlu1 %1228 }
 0x18d   :  { %v1132_v45 = vadd.f32 %v2097_v29, %v2821_v61  ;;  %v873_v53 = vpop.f32.mrb[23].mxu0  ;;  %1938 = vmatpush3.bf16.msra.mxu1 %v2837_v20  ;;  %v1163_v30 = vmax.f32 %v1131_v43, 0.0 }
 0x18e   :  { %v1130_v47 = vadd.f32 %v2817_v57, %v873_v53  ;;  %1939 = vmatprep.subr.bf16.mxu1 %v1182_v37  ;;  %v1161_v46 = vmax.f32 %v1129_v50, 0.0  ;;  %v1224_v37 = vpop.permute.xlu0 %1223 }
 0x18f   :  { %v1164_v10 = vmax.f32 %v1132_v45, 0.0 }
 0x190   :  { %v1162_v49 = vmax.f32 %v1130_v47, 0.0 }
 0x191   :  { %v1184_v54 = vpack.c.bf16 %v1164_v10, %v1163_v30  ;;  %1940 = vmatpush3.bf16.msra.mxu1 %v2833_v51 }
 0x192   :  { %v1183_v60 = vpack.c.bf16 %v1162_v49, %v1161_v46  ;;  %v2100_v55 = vpop.f32.mrb[24].mxu0  ;;  %v1234_v49 = vpop.permute.xlu0 %1233 }
 0x193   :  { %v1135_v56 = vadd.f32 %v2100_v55, %v2827_v0  ;;  %v886_v58 = vpop.f32.mrb[25].mxu0 }
 0x194   :  { %v1133_v61 = vadd.f32 %v2823_v36, %v886_v58  ;;  %v2101_v59 = vpop.f32.mrb[26].mxu0  ;;  %1941 = vmatprep.subr.bf16.mxu1 %v1183_v60 }
 0x195   :  { %v1136_v20 = vadd.f32 %v2101_v59, %v2829_v1  ;;  %v889_v57 = vpop.f32.mrb[27].mxu0  ;;  %1942 = vmatpush3.bf16.msra.mxu1 %v2841_v41  ;;  %v1167_v2 = vmax.f32 %v1135_v56, 0.0  ;;  %v1239_v56 = vpop.permute.xlu1 %1238 }
 0x196   :  { %v1134_v63 = vadd.f32 %v2825_v38, %v889_v57  ;;  %1943 = vmatprep.subr.bf16.mxu1 %v1184_v54  ;;  %v1165_v51 = vmax.f32 %v1133_v61, 0.0 }
 0x197   :  { %v1168_v6 = vmax.f32 %v1136_v20, 0.0 }
 0x198   :  { %v1166_v7 = vmax.f32 %v1134_v63, 0.0 }
 0x199   :  { %v1186_v11 = vpack.c.bf16 %v1168_v6, %v1167_v2  ;;  %1944 = vmatpush3.bf16.msra.mxu1 %v2839_v40 }
 0x19a   :  { %v1185_v0 = vpack.c.bf16 %v1166_v7, %v1165_v51  ;;  %v2104_v13 = vpop.f32.mrb[28].mxu0  ;;  %v1244_v51 = vpop.permute.xlu0 %1243 }
 0x19b   :  { %v1139_v36 = vadd.f32 %v2104_v13, %v2843_v9  ;;  %v902_v12 = vpop.f32.mrb[29].mxu0  ;;  %v1249_v13 = vpop.permute.xlu1 %1248 }
 0x19c   :  { %v1137_v1 = vadd.f32 %v2831_v21, %v902_v12  ;;  %v2105_v8 = vpop.f32.mrb[30].mxu0  ;;  %1945 = vmatprep.subr.bf16.mxu1 %v1185_v0  ;;  %v2207_v21 = vld [vmem:[%s2993_s6] ss:$8 sps:$4 sm:$0xff]  }
 0x19d   :  { %v1140_v41 = vadd.f32 %v2105_v8, %v2845_v48  ;;  %v905_v38 = vpop.f32.mrb[31].mxu0  ;;  %1946 = vmatpush3.bf16.msra.mxu1 %v2849_v3  ;;  %v1171_v16 = vmax.f32 %v1139_v36, 0.0  ;;  %v2212_v48 = vld [vmem:[%s2993_s6 + $0x10] ss:$8 sps:$4 sm:$0xff]   ;;  %v2215_v3 = vld [vmem:[%s2993_s6 + $0x20] ss:$8 sps:$4 sm:$0xff]  }
 0x19e   :  { %v1138_v15 = vadd.f32 %v2835_v52, %v905_v38  ;;  %1947 = vmatprep.subr.bf16.mxu1 %v1186_v11  ;;  %v1169_v40 = vmax.f32 %v1137_v1, 0.0  ;;  %v2210_v52 = vld [vmem:[%s2993_s6 + $0x14] ss:$8 sps:$4 sm:$0xff]  }
 0x19f   :  { %v1172_v17 = vmax.f32 %v1140_v41, 0.0 }
 0x1a0   :  { %v1170_v14 = vmax.f32 %v1138_v15, 0.0 }
 0x1a1   :  { %v1188_v18 = vpack.c.bf16 %v1172_v17, %v1171_v16  ;;  %1948 = vmatpush3.bf16.msra.mxu1 %v2847_v62  ;;  %v2213_v62 = vld [vmem:[%s2993_s6 + $0x24] ss:$8 sps:$4 sm:$0xff]   ;;  %v1254_v17 = vpop.permute.xlu0 %1253 }
 0x1a2   :  { %v1187_v9 = vpack.c.bf16 %v1170_v14, %v1169_v40 }
 0x1a4   :  { %1949 = vmatprep.subr.bf16.mxu1 %v1187_v9  ;;  %v1259_v9 = vpop.permute.xlu1 %1258 }
 0x1a5   :  { %1950 = vmatpush3.bf16.msra.mxu1 %v2853_v23  ;;  %v2219_v23 = vld [vmem:[%s2993_s6 + $0x44] ss:$8 sps:$4 sm:$0xff]  }
 0x1a6   :  { %1951 = vmatprep.subr.bf16.mxu1 %v1188_v18 }
 0x1a9   :  { %1952 = vmatpush3.bf16.msra.mxu1 %v2851_v4  ;;  %v2218_v4 = vld [vmem:[%s2993_s6 + $0x30] ss:$8 sps:$4 sm:$0xff]  }
 0x1aa   :  { %2106 = vmatprep.subr.bf16.mxu1 %v2231_v31 }
 0x1ac   :  { %1414 = vmatmul.mubr.bf16.vlgmr.msra.gmra.mrb[0].mxu1 %v2207_v21 }
 0x1ad   :  { %1421 = vmatprep.mubr.bf16.mxu1 %v2210_v52 }
 0x1b2   :  { %2107 = vmatpush3.bf16.xpose.msra.mxu1 %v2231_v31 }
 0x1b4   :  { %1422 = vmatmul.mubr.bf16.gmra.mrb[4].mxu1 %v2212_v48 }
 0x1b5   :  { %1429 = vmatprep.mubr.bf16.mxu1 %v2213_v62 }
 0x1bc   :  { %1430 = vmatmul.mubr.bf16.gmra.mrb[8].mxu1 %v2215_v3 }
 0x1bd   :  { %1437 = vmatprep.mubr.bf16.mxu1 %v2216_v19 }
 0x1c4   :  { %1438 = vmatmul.mubr.bf16.gmra.mrb[12].mxu1 %v2218_v4 }
 0x1c5   :  { %1445 = vmatprep.mubr.bf16.mxu1 %v2219_v23 }
 0x1cc   :  { %1446 = vmatmul.mubr.bf16.gmra.mrb[16].mxu1 %v2221_v24  ;;  %v1264_v24 = vpop.permute.xlu0 %1263 }
 0x1cd   :  { %1453 = vmatprep.mubr.bf16.mxu1 %v2222_v22 }
 0x1d4   :  { %1454 = vmatmul.mubr.bf16.gmra.mrb[20].mxu1 %v2224_v25 }
 0x1d5   :  { %1461 = vmatprep.mubr.bf16.mxu1 %v2225_v5 }
 0x1dc   :  { %1462 = vmatmul.mubr.bf16.gmra.mrb[24].mxu1 %v2227_v26  ;;  %v1269_v26 = vpop.permute.xlu1 %1268 }
 0x1dd   :  { %1469 = vmatprep.mubr.bf16.mxu1 %v2228_v27 }
 0x1e4   :  { %1470 = vmatmul.mubr.bf16.gmra.mrb[28].mxu1 %v2230_v28 }
 0x27f   :  { %v1953_v32 = vpop.f32.mrb[0].mxu1 }
 0x280   :  { %v1954_v33 = vpop.f32.mrb[1].mxu1 }
 0x281   :  { %v1955_v34 = vadd.f32 %v1954_v33, %v1953_v32  ;;  %v1956_v35 = vpop.f32.mrb[2].mxu1 }
 0x282   :  { %v1957_v39 = vpop.f32.mrb[3].mxu1 }
 0x283   :  { %v1416_v42 = vadd.f32 %v1955_v34, %v1224_v37  ;;  %v1958_v43 = vadd.f32 %v1957_v39, %v1956_v35  ;;  %v1274_v39 = vpop.permute.xlu0 %1273 }
 0x285   :  { %v1419_v50 = vadd.f32 %v1958_v43, %v1229_v44  ;;  %v1478_v29 = vmax.f32 %v1416_v42, 0.0 }
 0x287   :  { %v1479_v45 = vmax.f32 %v1419_v50, 0.0  ;;  %v1959_v53 = vpop.f32.mrb[4].mxu1  ;;  %v1279_v50 = vpop.permute.xlu1 %1278 }
 0x288   :  { %v1960_v47 = vpop.f32.mrb[5].mxu1 }
 0x289   :  { %v1961_v30 = vadd.f32 %v1960_v47, %v1959_v53  ;;  %v1962_v10 = vpop.f32.mrb[6].mxu1  ;;  %v1494_v46 = vpack.c.bf16 %v1479_v45, %v1478_v29 }
 0x28a   :  { %v1963_v54 = vpop.f32.mrb[7].mxu1 }
 0x28b   :  { %v1424_v60 = vadd.f32 %v1961_v30, %v1234_v49  ;;  %v1964_v55 = vadd.f32 %v1963_v54, %v1962_v10  ;;  %1511 = vxpose.xlu0.c.b16.start [1/8] %v1494_v46, 128  ;;  %v1284_v54 = vpop.permute.xlu0 %1283 }
 0x28d   :  { %v1427_v58 = vadd.f32 %v1964_v55, %v1239_v56  ;;  %v1480_v61 = vmax.f32 %v1424_v60, 0.0 }
 0x28f   :  { %v1481_v59 = vmax.f32 %v1427_v58, 0.0  ;;  %v1965_v20 = vpop.f32.mrb[8].mxu1  ;;  %v1289_v58 = vpop.permute.xlu1 %1288 }
 0x290   :  { %v1966_v57 = vpop.f32.mrb[9].mxu1 }
 0x291   :  { %v1495_v63 = vpack.c.bf16 %v1481_v59, %v1480_v61  ;;  %v1967_v2 = vadd.f32 %v1966_v57, %v1965_v20  ;;  %v1968_v6 = vpop.f32.mrb[10].mxu1 }
 0x292   :  { %v1969_v7 = vpop.f32.mrb[11].mxu1 }
 0x293   :  { %v1432_v11 = vadd.f32 %v1967_v2, %v1244_v51  ;;  %v1970_v0 = vadd.f32 %v1969_v7, %v1968_v6  ;;  %1512 = vxpose.xlu0.c.b16.cont [2/8] %v1495_v63, 128  ;;  %v1294_v7 = vpop.permute.xlu0 %1293 }
 0x295   :  { %v1435_v36 = vadd.f32 %v1970_v0, %v1249_v13  ;;  %v1482_v12 = vmax.f32 %v1432_v11, 0.0 }
 0x297   :  { %v1483_v1 = vmax.f32 %v1435_v36, 0.0  ;;  %v1971_v8 = vpop.f32.mrb[12].mxu1  ;;  %v1299_v36 = vpop.permute.xlu1 %1298 }
 0x298   :  { %v1972_v41 = vpop.f32.mrb[13].mxu1 }
 0x299   :  { %v1496_v38 = vpack.c.bf16 %v1483_v1, %v1482_v12  ;;  %v1973_v15 = vadd.f32 %v1972_v41, %v1971_v8  ;;  %v1974_v16 = vpop.f32.mrb[14].mxu1 }
 0x29a   :  { %v1975_v40 = vpop.f32.mrb[15].mxu1 }
 0x29b   :  { %v1440_v14 = vadd.f32 %v1973_v15, %v1254_v17  ;;  %v1976_v18 = vadd.f32 %v1975_v40, %v1974_v16  ;;  %1513 = vxpose.xlu0.c.b16.cont [3/8] %v1496_v38, 128 }
 0x29d   :  { %v1443_v21 = vadd.f32 %v1976_v18, %v1259_v9  ;;  %v1484_v52 = vmax.f32 %v1440_v14, 0.0 }
 0x29f   :  { %v1485_v48 = vmax.f32 %v1443_v21, 0.0  ;;  %v1977_v62 = vpop.f32.mrb[16].mxu1  ;;  %v2930_v21 = vld [vmem:[%s2995_s9] ss:$0 sm:$0xff] }
 0x2a0   :  { %v1978_v3 = vpop.f32.mrb[17].mxu1 }
 0x2a1   :  { %v1497_v19 = vpack.c.bf16 %v1485_v48, %v1484_v52  ;;  %v1979_v4 = vadd.f32 %v1978_v3, %v1977_v62  ;;  %v1980_v23 = vpop.f32.mrb[18].mxu1 }
 0x2a2   :  { %v1981_v22 = vpop.f32.mrb[19].mxu1 }
 0x2a3   :  { %v1448_v25 = vadd.f32 %v1979_v4, %v1264_v24  ;;  %v1982_v5 = vadd.f32 %v1981_v22, %v1980_v23  ;;  %1514 = vxpose.xlu0.c.b16.cont [4/8] %v1497_v19, 128 }
 0x2a5   :  { %v1451_v27 = vadd.f32 %v1982_v5, %v1269_v26  ;;  %v1486_v28 = vmax.f32 %v1448_v25, 0.0 }
 0x2a7   :  { %v1487_v31 = vmax.f32 %v1451_v27, 0.0  ;;  %v1983_v32 = vpop.f32.mrb[20].mxu1 }
 0x2a8   :  { %v1984_v33 = vpop.f32.mrb[21].mxu1 }
 0x2a9   :  { %v1498_v34 = vpack.c.bf16 %v1487_v31, %v1486_v28  ;;  %v1985_v35 = vadd.f32 %v1984_v33, %v1983_v32  ;;  %v1986_v37 = vpop.f32.mrb[22].mxu1 }
 0x2aa   :  { %v1987_v42 = vpop.f32.mrb[23].mxu1 }
 0x2ab   :  { %v1456_v43 = vadd.f32 %v1985_v35, %v1274_v39  ;;  %v1988_v44 = vadd.f32 %v1987_v42, %v1986_v37  ;;  %1515 = vxpose.xlu0.c.b16.cont [5/8] %v1498_v34, 128 }
 0x2ad   :  { %v1459_v29 = vadd.f32 %v1988_v44, %v1279_v50  ;;  %v1488_v45 = vmax.f32 %v1456_v43, 0.0 }
 0x2af   :  { %v1489_v53 = vmax.f32 %v1459_v29, 0.0  ;;  %v1989_v47 = vpop.f32.mrb[24].mxu1 }
 0x2b0   :  { %v1990_v30 = vpop.f32.mrb[25].mxu1 }
 0x2b1   :  { %v1499_v10 = vpack.c.bf16 %v1489_v53, %v1488_v45  ;;  %v1991_v46 = vadd.f32 %v1990_v30, %v1989_v47  ;;  %v1992_v49 = vpop.f32.mrb[26].mxu1 }
 0x2b2   :  { %v1993_v60 = vpop.f32.mrb[27].mxu1 }
 0x2b3   :  { %v1464_v55 = vadd.f32 %v1991_v46, %v1284_v54  ;;  %v1994_v56 = vadd.f32 %v1993_v60, %v1992_v49  ;;  %1516 = vxpose.xlu0.c.b16.cont [6/8] %v1499_v10, 128 }
 0x2b5   :  { %v1467_v61 = vadd.f32 %v1994_v56, %v1289_v58  ;;  %v1490_v59 = vmax.f32 %v1464_v55, 0.0 }
 0x2b7   :  { %v1491_v20 = vmax.f32 %v1467_v61, 0.0  ;;  %v1995_v57 = vpop.f32.mrb[28].mxu1 }
 0x2b8   :  { %v1996_v63 = vpop.f32.mrb[29].mxu1 }
 0x2b9   :  { %v1500_v2 = vpack.c.bf16 %v1491_v20, %v1490_v59  ;;  %v1997_v6 = vadd.f32 %v1996_v63, %v1995_v57  ;;  %v1998_v51 = vpop.f32.mrb[30].mxu1 }
 0x2ba   :  { %v1999_v11 = vpop.f32.mrb[31].mxu1 }
 0x2bb   :  { %v1472_v0 = vadd.f32 %v1997_v6, %v1294_v7  ;;  %v2000_v13 = vadd.f32 %v1999_v11, %v1998_v51  ;;  %1517 = vxpose.xlu0.c.b16.cont [7/8] %v1500_v2, 128 }
 0x2bd   :  { %v1475_v12 = vadd.f32 %v2000_v13, %v1299_v36  ;;  %v1492_v1 = vmax.f32 %v1472_v0, 0.0 }
 0x2bf   :  { %v1493_v8 = vmax.f32 %v1475_v12, 0.0 }
 0x2c1   :  { %v1501_v41 = vpack.c.bf16 %v1493_v8, %v1492_v1 }
 0x2c3   :  { %1518 = vxpose.xlu0.c.b16.end [8/8] %v1501_v41, 128 }
 0x30d   :  { %v1519_v38 = vpop.trf.xlu0 }
 0x30e   :  { %2108 = vmatprep.mubr.bf16.mxu1 %v1519_v38 }
 0x311   :  { %v1520_v15 = vpop.trf.xlu0 }
 0x312   :  { %2109 = vmatmul.mubr.bf16.vlgmr.msra.gmra.mrb[32].mxu1 %v1520_v15 }
 0x315   :  { %v1521_v16 = vpop.trf.xlu0 }
 0x316   :  { %2112 = vmatprep.mubr.bf16.mxu1 %v1521_v16 }
 0x319   :  { %v1522_v17 = vpop.trf.xlu0 }
 0x31a   :  { %2113 = vmatmul.mubr.bf16.gmra.mrb[36].mxu1 %v1522_v17 }
 0x31d   :  { %v1523_v40 = vpop.trf.xlu0 }
 0x31e   :  { %2116 = vmatprep.mubr.bf16.mxu1 %v1523_v40 }
 0x321   :  { %v1524_v14 = vpop.trf.xlu0 }
 0x322   :  { %2117 = vmatmul.mubr.bf16.gmra.mrb[40].mxu1 %v1524_v14 }
 0x325   :  { %v1525_v18 = vpop.trf.xlu0 }
 0x326   :  { %2120 = vmatprep.mubr.bf16.mxu1 %v1525_v18 }
 0x329   :  { %v1526_v9 = vpop.trf.xlu0 }
 0x32a   :  { %2121 = vmatmul.mubr.bf16.gmra.mrb[44].mxu1 %v1526_v9 }
 0x3e5   :  { %v2110_v52 = vpop.f32.mrb[32].mxu1 }
 0x3e6   :  { %v1576_v48 = vadd.f32 %v2110_v52, %v2930_v21  ;;  %v1567_v62 = vpop.f32.mrb[33].mxu1 }
 0x3e7   :  { %v1568_v3 = vadd.f32 %v2930_v21, %v1567_v62  ;;  %v2111_v19 = vpop.f32.mrb[34].mxu1 }
 0x3e8   :  { %v1875_v4 = vmul.f32 -1.442695, %v1576_v48  ;;  %v1579_v23 = vadd.f32 %v2111_v19, %v2930_v21  ;;  %v1570_v24 = vpop.f32.mrb[35].mxu1 }
 0x3e9   :  { %v1873_v22 = vmul.f32 -1.442695, %v1568_v3  ;;  %v1571_v25 = vadd.f32 %v2930_v21, %v1570_v24 }
 0x3ea   :  { %2232 = vpow2.f32 %v1875_v4  ;;  %v1876_v5 = vmul.f32 -1.442695, %v1579_v23 }
 0x3eb   :  { %2234 = vpow2.f32 %v1873_v22  ;;  %v1874_v26 = vmul.f32 -1.442695, %v1571_v25 }
 0x3ec   :  { %2236 = vpow2.f32 %v1876_v5 }
 0x3ed   :  { %2238 = vpow2.f32 %v1874_v26  ;;  %v2114_v27 = vpop.f32.mrb[36].mxu1 }
 0x3ee   :  { %v1592_v28 = vadd.f32 %v2114_v27, %v2930_v21  ;;  %v1583_v31 = vpop.f32.mrb[37].mxu1 }
 0x3ef   :  { %v1584_v32 = vadd.f32 %v2930_v21, %v1583_v31  ;;  %v2115_v33 = vpop.f32.mrb[38].mxu1 }
 0x3f0   :  { %v1879_v34 = vmul.f32 -1.442695, %v1592_v28  ;;  %v1595_v35 = vadd.f32 %v2115_v33, %v2930_v21  ;;  %v1586_v37 = vpop.f32.mrb[39].mxu1 }
 0x3f1   :  { %v1877_v39 = vmul.f32 -1.442695, %v1584_v32  ;;  %v1587_v42 = vadd.f32 %v2930_v21, %v1586_v37 }
 0x3f2   :  { %2240 = vpow2.f32 %v1879_v34  ;;  %v1880_v43 = vmul.f32 -1.442695, %v1595_v35 }
 0x3f3   :  { %2242 = vpow2.f32 %v1877_v39  ;;  %v1878_v44 = vmul.f32 -1.442695, %v1587_v42 }
 0x3f4   :  { %v2233_v50 = vpop.eup %2232  ;;  %2244 = vpow2.f32 %v1880_v43 }
 0x3f5   :  { %v2235_v29 = vpop.eup %2234  ;;  %v1680_v45 = vadd.f32 1.0, %v2233_v50  ;;  %2246 = vpow2.f32 %v1878_v44  ;;  %v2118_v53 = vpop.f32.mrb[40].mxu1 }
 0x3f6   :  { %v2237_v47 = vpop.eup %2236  ;;  %v1678_v30 = vadd.f32 1.0, %v2235_v29  ;;  %v1608_v10 = vadd.f32 %v2118_v53, %v2930_v21  ;;  %v1599_v46 = vpop.f32.mrb[41].mxu1 }
 0x3f7   :  { %v2239_v49 = vpop.eup %2238  ;;  %2248 = vrcp.f32 %v1680_v45  ;;  %v1681_v54 = vadd.f32 1.0, %v2237_v47  ;;  %v1600_v60 = vadd.f32 %v2930_v21, %v1599_v46  ;;  %v2119_v55 = vpop.f32.mrb[42].mxu1 }
 0x3f8   :  { %2250 = vrcp.f32 %v1678_v30  ;;  %v1679_v56 = vadd.f32 1.0, %v2239_v49  ;;  %v1883_v58 = vmul.f32 -1.442695, %v1608_v10  ;;  %v1611_v61 = vadd.f32 %v2119_v55, %v2930_v21  ;;  %v1602_v59 = vpop.f32.mrb[43].mxu1 }
 0x3f9   :  { %2252 = vrcp.f32 %v1681_v54  ;;  %v1881_v20 = vmul.f32 -1.442695, %v1600_v60  ;;  %v1603_v57 = vadd.f32 %v2930_v21, %v1602_v59 }
 0x3fa   :  { %2254 = vrcp.f32 %v1679_v56  ;;  %v1884_v63 = vmul.f32 -1.442695, %v1611_v61 }
 0x3fb   :  { %2256 = vpow2.f32 %v1883_v58  ;;  %v1882_v2 = vmul.f32 -1.442695, %v1603_v57 }
 0x3fc   :  { %v2241_v6 = vpop.eup %2240  ;;  %2258 = vpow2.f32 %v1881_v20 }
 0x3fd   :  { %v2243_v51 = vpop.eup %2242  ;;  %v1684_v7 = vadd.f32 1.0, %v2241_v6  ;;  %2260 = vpow2.f32 %v1884_v63  ;;  %v2122_v11 = vpop.f32.mrb[44].mxu1 }
 0x3fe   :  { %v2245_v0 = vpop.eup %2244  ;;  %v1682_v13 = vadd.f32 1.0, %v2243_v51  ;;  %2262 = vpow2.f32 %v1882_v2  ;;  %v1624_v36 = vadd.f32 %v2122_v11, %v2930_v21  ;;  %v1615_v12 = vpop.f32.mrb[45].mxu1 }
 0x3ff   :  { %v2247_v1 = vpop.eup %2246  ;;  %2264 = vrcp.f32 %v1684_v7  ;;  %v1685_v8 = vadd.f32 1.0, %v2245_v0  ;;  %v1616_v41 = vadd.f32 %v2930_v21, %v1615_v12  ;;  %v2123_v38 = vpop.f32.mrb[46].mxu1 }
 0x400   :  { %2266 = vrcp.f32 %v1682_v13  ;;  %v1683_v15 = vadd.f32 1.0, %v2247_v1  ;;  %v1887_v16 = vmul.f32 -1.442695, %v1624_v36  ;;  %v1627_v17 = vadd.f32 %v2123_v38, %v2930_v21  ;;  %v1618_v40 = vpop.f32.mrb[47].mxu1 }
 0x401   :  { %v2249_v14 = vpop.eup %2248  ;;  %2268 = vrcp.f32 %v1685_v8  ;;  %v1885_v18 = vmul.f32 -1.442695, %v1616_v41  ;;  %v1619_v9 = vadd.f32 %v2930_v21, %v1618_v40 }
 0x402   :  { %v2251_v52 = vpop.eup %2250  ;;  %1728 = vst.msk [vmem:[%s2949_s1 + $0x10] sm:$0xff] %vm370_vm0, %v2249_v14  ;;  %2270 = vrcp.f32 %v1683_v15  ;;  %v1888_v48 = vmul.f32 -1.442695, %v1627_v17 }
 0x403   :  { %v2253_v62 = vpop.eup %2252  ;;  %1726 = vst.msk [vmem:[%s2949_s1] sm:$0xff] %vm370_vm0, %v2251_v52  ;;  %2272 = vpow2.f32 %v1887_v16  ;;  %v1886_v3 = vmul.f32 -1.442695, %v1619_v9 }
 0x404   :  { %v2255_v19 = vpop.eup %2254  ;;  %1729 = vst.msk [vmem:[%s2949_s1 + $0x18] sm:$0xff] %vm370_vm0, %v2253_v62  ;;  %2274 = vpow2.f32 %v1885_v18 }
 0x405   :  { %v2257_v4 = vpop.eup %2256  ;;  %1727 = vst.msk [vmem:[%s2949_s1 + $0x8] sm:$0xff] %vm370_vm0, %v2255_v19  ;;  %2276 = vpow2.f32 %v1888_v48 }
 0x406   :  { %v2259_v21 = vpop.eup %2258  ;;  %v1688_v23 = vadd.f32 1.0, %v2257_v4  ;;  %2278 = vpow2.f32 %v1886_v3 }
 0x407   :  { %v2261_v24 = vpop.eup %2260  ;;  %v1686_v22 = vadd.f32 1.0, %v2259_v21 }
 0x408   :  { %v2263_v25 = vpop.eup %2262  ;;  %2280 = vrcp.f32 %v1688_v23  ;;  %v1689_v5 = vadd.f32 1.0, %v2261_v24 }
 0x409   :  { %v2265_v26 = vpop.eup %2264  ;;  %2282 = vrcp.f32 %v1686_v22  ;;  %v1687_v27 = vadd.f32 1.0, %v2263_v25 }
 0x40a   :  { %v2267_v28 = vpop.eup %2266  ;;  %1732 = vst.msk [vmem:[%s2949_s1 + $0x30] sm:$0xff] %vm370_vm0, %v2265_v26  ;;  %2284 = vrcp.f32 %v1689_v5 }
 0x40b   :  { %v2269_v31 = vpop.eup %2268  ;;  %1730 = vst.msk [vmem:[%s2949_s1 + $0x20] sm:$0xff] %vm370_vm0, %v2267_v28  ;;  %2286 = vrcp.f32 %v1687_v27 }
 0x40c   :  { %v2271_v32 = vpop.eup %2270  ;;  %1733 = vst.msk [vmem:[%s2949_s1 + $0x38] sm:$0xff] %vm370_vm0, %v2269_v31 }
 0x40d   :  { %v2273_v33 = vpop.eup %2272  ;;  %1731 = vst.msk [vmem:[%s2949_s1 + $0x28] sm:$0xff] %vm370_vm0, %v2271_v32 }
 0x40e   :  { %v2275_v34 = vpop.eup %2274  ;;  %v1692_v35 = vadd.f32 1.0, %v2273_v33 }
 0x40f   :  { %v2277_v37 = vpop.eup %2276  ;;  %v1690_v39 = vadd.f32 1.0, %v2275_v34 }
 0x410   :  { %v2279_v42 = vpop.eup %2278  ;;  %2288 = vrcp.f32 %v1692_v35  ;;  %v1693_v43 = vadd.f32 1.0, %v2277_v37 }
 0x411   :  { %2290 = vrcp.f32 %v1690_v39  ;;  %v1691_v44 = vadd.f32 1.0, %v2279_v42 }
 0x412   :  { %v2281_v50 = vpop.eup %2280  ;;  %2292 = vrcp.f32 %v1693_v43 }
 0x413   :  { %v2283_v29 = vpop.eup %2282  ;;  %1736 = vst.msk [vmem:[%s2949_s1 + $0x50] sm:$0xff] %vm370_vm0, %v2281_v50  ;;  %2294 = vrcp.f32 %v1691_v44 }
 0x414   :  { %v2285_v45 = vpop.eup %2284  ;;  %1734 = vst.msk [vmem:[%s2949_s1 + $0x40] sm:$0xff] %vm370_vm0, %v2283_v29 }
 0x415   :  { %v2287_v53 = vpop.eup %2286  ;;  %1737 = vst.msk [vmem:[%s2949_s1 + $0x58] sm:$0xff] %vm370_vm0, %v2285_v45 }
 0x416   :  { %1735 = vst.msk [vmem:[%s2949_s1 + $0x48] sm:$0xff] %vm370_vm0, %v2287_v53 }
 0x41a   :  { %v2289_v47 = vpop.eup %2288 }
 0x41b   :  { %v2291_v30 = vpop.eup %2290  ;;  %1740 = vst.msk [vmem:[%s2949_s1 + $0x70] sm:$0xff] %vm370_vm0, %v2289_v47 }
 0x41c   :  { %v2293_v10 = vpop.eup %2292  ;;  %1738 = vst.msk [vmem:[%s2949_s1 + $0x60] sm:$0xff] %vm370_vm0, %v2291_v30 }
 0x41d   :  { %v2295_v46 = vpop.eup %2294  ;;  %1741 = vst.msk [vmem:[%s2949_s1 + $0x78] sm:$0xff] %vm370_vm0, %v2293_v10 }
 0x41e   :  { %1739 = vst.msk [vmem:[%s2949_s1 + $0x68] sm:$0xff] %vm370_vm0, %v2295_v46 }

// kernel: tpu_custom_call.1
= control target key start
LH: loop header
LB: loop body
LE: loop exit
PB: predicated region body
PF: predicated region fallthrough
CT: control target
= control target key end

     0   :  { %v2189_v0 = vmov 0   ;;  %vm308_vm0 = vcmask 130048   ;;  %s2981_s2 = inlined_call_operand.vmem [shape: f32[128,16], index: 2, kind: input, shape index: {}]   ;;  %s2982_s4 = inlined_call_operand.vmem [shape: bf16[256,16], index: 4, kind: input, shape index: {}]   ;;  %s2983_s5 = inlined_call_operand.vmem [shape: f32[256,1], index: 5, kind: input, shape index: {}]   ;;  %s2984_s3 = inlined_call_operand.vmem [shape: bf16[256,16], index: 3, kind: input, shape index: {}]   ;;  %s2985_s0 = inlined_call_operand.vmem [shape: f32[128,16], index: 0, kind: input, shape index: {}]   ;;  %s2986_s1 = inlined_call_operand.vmem [shape: f32[128,16], index: 1, kind: input, shape index: {}]   ;;  %s2987_s7 = inlined_call_operand.vmem [shape: f32[128,1], index: 7, kind: input, shape index: {}]   ;;  %s2988_s6 = inlined_call_operand.vmem [shape: bf16[128,256], index: 6, kind: input, shape index: {}]   ;;  %s2989_s8 = inlined_call_operand.vmem [shape: bf16[16,128], index: 8, kind: input, shape index: {}]   ;;  %s2990_s9 = inlined_call_operand.vmem [shape: f32[1,16], index: 9, kind: input, shape index: {}]   ;;  %s2991_s10 = inlined_call_operand.vmem [shape: f32[128,16], index: 10, kind: output, shape index: {}]  }
   0x1   :  { %2067 = vset.pattern.permute.xlu1 %v2189_v0  ;;  %2066 = vset.pattern.permute.xlu0 %v2189_v0  ;;  %v2248_v1 = vld [vmem:[%s2981_s2] sm:$0xff]  ;;  %v2253_v2 = vld [vmem:[%s2981_s2 + $0x8] sm:$0xff]  ;;  %v2258_v3 = vld [vmem:[%s2981_s2 + $0x10] sm:$0xff] }
   0x2   :  { %v2263_v4 = vld [vmem:[%s2981_s2 + $0x18] sm:$0xff]  ;;  %v156_v5 = vpack.c.bf16 %v2253_v2, %v2248_v1  ;;  %v2068_v8 = vld [vmem:[%s2982_s4] sm:$0xff]   ;;  %v2283_v10 = vld [vmem:[%s2981_s2 + $0x28] sm:$0xff]  ;;  %v100_v41 = vsub.f32 1.0, %v2248_v1  ;;  %v101_v42 = vsub.f32 1.0, %v2253_v2  ;;  %v102_v57 = vsub.f32 1.0, %v2258_v3 }
   0x3   :  { %v157_v6 = vpack.c.bf16 %v2263_v4, %v2258_v3  ;;  %v2278_v9 = vld [vmem:[%s2981_s2 + $0x20] sm:$0xff]  ;;  %1919 = vmatprep.mubr.msk.bf16.mxu0 %vm308_vm0, %v2068_v8  ;;  %v2293_v13 = vld [vmem:[%s2981_s2 + $0x30] sm:$0xff]  ;;  %v2298_v14 = vld [vmem:[%s2981_s2 + $0x38] sm:$0xff]  ;;  %v103_v60 = vsub.f32 1.0, %v2263_v4 }
   0x4   :  { %2049 = vmatprep.subr.msk.bf16.mxu0 %vm308_vm0, %v156_v5  ;;  %v358_v7 = vsel %vm308_vm0, %v156_v5, 0  ;;  %v158_v12 = vpack.c.bf16 %v2283_v10, %v2278_v9  ;;  %v159_v16 = vpack.c.bf16 %v2298_v14, %v2293_v13  ;;  %v2307_v17 = vld [vmem:[%s2981_s2 + $0x40] sm:$0xff]  ;;  %v2312_v18 = vld [vmem:[%s2981_s2 + $0x48] sm:$0xff]  ;;  %v2321_v21 = vld [vmem:[%s2981_s2 + $0x50] sm:$0xff] }
   0x5   :  { %1904 = vmatpush3.bf16.xpose.msra.mxu0 %v358_v7  ;;  %v361_v11 = vsel %vm308_vm0, %v157_v6, 0  ;;  %v160_v20 = vpack.c.bf16 %v2312_v18, %v2307_v17  ;;  %v2326_v22 = vld [vmem:[%s2981_s2 + $0x58] sm:$0xff]  ;;  %v871_v23 = vld [vmem:[%s2983_s5 + $0x80] sm:$0xff]  ;;  %v872_v27 = vld [vmem:[%s2983_s5 + $0x88] sm:$0xff] }
   0x6   :  { %2050 = vmatprep.subr.msk.bf16.mxu0 %vm308_vm0, %v157_v6  ;;  %v364_v15 = vsel %vm308_vm0, %v158_v12, 0  ;;  %v367_v19 = vsel %vm308_vm0, %v159_v16, 0  ;;  %v855_v24 = vld [vmem:[%s2983_s5] sm:$0xff]  ;;  %969 = vperm.xlu0 %2066, %v871_v23   ;;  %v161_v26 = vpack.c.bf16 %v2326_v22, %v2321_v21  ;;  %v856_v28 = vld [vmem:[%s2983_s5 + $0x8] sm:$0xff]  ;;  %v873_v30 = vld [vmem:[%s2983_s5 + $0x90] sm:$0xff] }
   0x7   :  { %889 = vperm.xlu1 %2067, %v855_v24   ;;  %v370_v25 = vsel %vm308_vm0, %v160_v20, 0  ;;  %v2347_v29 = vld [vmem:[%s2981_s2 + $0x60] sm:$0xff]  ;;  %v2355_v31 = vld [vmem:[%s2981_s2 + $0x68] sm:$0xff]  ;;  %v874_v32 = vld [vmem:[%s2983_s5 + $0x98] sm:$0xff] }
   0x8   :  { %v373_v33 = vsel %vm308_vm0, %v161_v26, 0  ;;  %v162_v34 = vpack.c.bf16 %v2355_v31, %v2347_v29  ;;  %v857_v35 = vld [vmem:[%s2983_s5 + $0x10] sm:$0xff]  ;;  %v858_v36 = vld [vmem:[%s2983_s5 + $0x18] sm:$0xff]  ;;  %v36_v37 = vld [vmem:[%s2985_s0] sm:$0xff] }
   0x9   :  { %v37_v38 = vld [vmem:[%s2985_s0 + $0x8] sm:$0xff]  ;;  %v52_v39 = vld [vmem:[%s2986_s1] sm:$0xff]  ;;  %v2386_v43 = vld [vmem:[%s2981_s2 + $0x70] sm:$0xff]  ;;  %v84_v47 = vmul.f32 %v2248_v1, %v36_v37 }
   0xa   :  { %974 = vperm.xlu0 %2066, %v872_v27   ;;  %v53_v40 = vld [vmem:[%s2986_s1 + $0x8] sm:$0xff]  ;;  %v2391_v44 = vld [vmem:[%s2981_s2 + $0x78] sm:$0xff]  ;;  %v875_v45 = vld [vmem:[%s2983_s5 + $0xa0] sm:$0xff]  ;;  %v85_v48 = vmul.f32 %v2253_v2, %v37_v38  ;;  %v116_v49 = vmul.f32 %v100_v41, %v52_v39  ;;  %v376_v51 = vsel %vm308_vm0, %v162_v34, 0 }
   0xb   :  { %894 = vperm.xlu1 %2067, %v856_v28   ;;  %v876_v46 = vld [vmem:[%s2983_s5 + $0xa8] sm:$0xff]  ;;  %v117_v50 = vmul.f32 %v101_v42, %v53_v40  ;;  %v163_v52 = vpack.c.bf16 %v2391_v44, %v2386_v43  ;;  %v859_v53 = vld [vmem:[%s2983_s5 + $0x20] sm:$0xff]  ;;  %v38_v58 = vld [vmem:[%s2985_s0 + $0x10] sm:$0xff] }
   0xc   :  { %v860_v54 = vld [vmem:[%s2983_s5 + $0x28] sm:$0xff]  ;;  %v132_v55 = vadd.f32 %v116_v49, %v84_v47  ;;  %v39_v59 = vld [vmem:[%s2985_s0 + $0x18] sm:$0xff]  ;;  %v877_v61 = vld [vmem:[%s2983_s5 + $0xb0] sm:$0xff]  ;;  %v86_v5 = vmul.f32 %v2258_v3, %v38_v58 }
   0xd   :  { %1906 = vmatpush3.bf16.xpose.msra.mxu0 %v361_v11  ;;  %v133_v56 = vadd.f32 %v117_v50, %v85_v48  ;;  %v54_v62 = vld [vmem:[%s2986_s1 + $0x10] sm:$0xff]  ;;  %v55_v63 = vld [vmem:[%s2986_s1 + $0x18] sm:$0xff]  ;;  %v379_v1 = vsel %vm308_vm0, %v163_v52, 0  ;;  %v87_v6 = vmul.f32 %v2263_v4, %v39_v59  ;;  %v879_v23 = vld [vmem:[%s2983_s5 + $0xc0] sm:$0xff] }
   0xe   :  { %2051 = vmatprep.subr.msk.bf16.mxu0 %vm308_vm0, %v158_v12  ;;  %979 = vperm.xlu0 %2066, %v873_v30   ;;  %v878_v0 = vld [vmem:[%s2983_s5 + $0xb8] sm:$0xff]  ;;  %v118_v7 = vmul.f32 %v102_v57, %v54_v62  ;;  %v119_v8 = vmul.f32 %v103_v60, %v55_v63  ;;  %v861_v11 = vld [vmem:[%s2983_s5 + $0x30] sm:$0xff]  ;;  %v56_v24 = vld [vmem:[%s2986_s1 + $0x20] sm:$0xff] }
   0xf   :  { %984 = vperm.xlu1 %2067, %v874_v32   ;;  %v148_v2 = vpack.c.bf16 %v133_v56, %v132_v55  ;;  %v862_v12 = vld [vmem:[%s2983_s5 + $0x38] sm:$0xff]  ;;  %v2069_v27 = vld [vmem:[%s2982_s4 + $0x8] sm:$0xff]   ;;  %v2070_v30 = vld [vmem:[%s2982_s4 + $0x10] sm:$0xff]  }
  0x10   :  { %v134_v3 = vadd.f32 %v118_v7, %v86_v5  ;;  %v135_v4 = vadd.f32 %v119_v8, %v87_v6  ;;  %v863_v37 = vld [vmem:[%s2983_s5 + $0x40] sm:$0xff]  ;;  %v864_v38 = vld [vmem:[%s2983_s5 + $0x48] sm:$0xff]  ;;  %v42_v41 = vld [vmem:[%s2985_s0 + $0x30] sm:$0xff] }
  0x11   :  { %v671_v28 = vsel %vm308_vm0, %v148_v2, 0  ;;  %v43_v42 = vld [vmem:[%s2985_s0 + $0x38] sm:$0xff]  ;;  %v881_v47 = vld [vmem:[%s2983_s5 + $0xd0] sm:$0xff]  ;;  %v45_v62 = vld [vmem:[%s2985_s0 + $0x48] sm:$0xff] }
  0x12   :  { %899 = vperm.xlu0 %2066, %v857_v35   ;;  %v2071_v48 = vld [vmem:[%s2982_s4 + $0x18] sm:$0xff]   ;;  %v865_v57 = vld [vmem:[%s2983_s5 + $0x50] sm:$0xff]  ;;  %v60_v63 = vld [vmem:[%s2986_s1 + $0x40] sm:$0xff] }
  0x13   :  { %904 = vperm.xlu1 %2067, %v858_v36   ;;  %v882_v49 = vld [vmem:[%s2983_s5 + $0xd8] sm:$0xff]  ;;  %v884_v5 = vld [vmem:[%s2983_s5 + $0xe8] sm:$0xff]  ;;  %v2074_v7 = vld [vmem:[%s2982_s4 + $0x30] sm:$0xff]  }
  0x14   :  { %v866_v58 = vld [vmem:[%s2983_s5 + $0x58] sm:$0xff] }
  0x15   :  { %1908 = vmatpush3.bf16.xpose.msra.mxu0 %v364_v15  ;;  %v104_v15 = vsub.f32 1.0, %v2278_v9 }
  0x16   :  { %2052 = vmatprep.subr.msk.bf16.mxu0 %vm308_vm0, %v159_v16  ;;  %989 = vperm.xlu0 %2066, %v875_v45   ;;  %v105_v16 = vsub.f32 1.0, %v2283_v10  ;;  %v58_v45 = vld [vmem:[%s2986_s1 + $0x30] sm:$0xff] }
  0x17   :  { %994 = vperm.xlu1 %2067, %v876_v46   ;;  %v120_v35 = vmul.f32 %v104_v15, %v56_v24  ;;  %v59_v46 = vld [vmem:[%s2986_s1 + $0x38] sm:$0xff] }
  0x18   :  { %v47_v24 = vld [vmem:[%s2985_s0 + $0x58] sm:$0xff] }
  0x1a   :  { %909 = vperm.xlu0 %2066, %v859_v53  }
  0x1b   :  { %914 = vperm.xlu1 %2067, %v860_v54   ;;  %v91_v54 = vmul.f32 %v2298_v14, %v43_v42  ;;  %v49_v42 = vld [vmem:[%s2985_s0 + $0x68] sm:$0xff] }
  0x1d   :  { %1910 = vmatpush3.bf16.xpose.msra.mxu0 %v367_v19  ;;  %v40_v19 = vld [vmem:[%s2985_s0 + $0x20] sm:$0xff] }
  0x1e   :  { %2053 = vmatprep.subr.msk.bf16.mxu0 %vm308_vm0, %v160_v20  ;;  %999 = vperm.xlu0 %2066, %v877_v61   ;;  %v41_v20 = vld [vmem:[%s2985_s0 + $0x28] sm:$0xff]  ;;  %v88_v32 = vmul.f32 %v2278_v9, %v40_v19  ;;  %v106_v9 = vsub.f32 1.0, %v2293_v13  ;;  %v44_v61 = vld [vmem:[%s2985_s0 + $0x40] sm:$0xff] }
  0x1f   :  { %1004 = vperm.xlu1 %2067, %v878_v0   ;;  %v61_v0 = vld [vmem:[%s2986_s1 + $0x48] sm:$0xff]  ;;  %v92_v8 = vmul.f32 %v2307_v17, %v44_v61  ;;  %v66_v61 = vld [vmem:[%s2986_s1 + $0x70] sm:$0xff] }
  0x20   :  { %v136_v39 = vadd.f32 %v120_v35, %v88_v32  ;;  %v122_v55 = vmul.f32 %v106_v9, %v58_v45  ;;  %v869_v9 = vld [vmem:[%s2983_s5 + $0x70] sm:$0xff]  ;;  %v64_v45 = vld [vmem:[%s2986_s1 + $0x60] sm:$0xff] }
  0x22   :  { %919 = vperm.xlu0 %2066, %v861_v11  }
  0x23   :  { %924 = vperm.xlu1 %2067, %v862_v12   ;;  %v93_v12 = vmul.f32 %v2312_v18, %v45_v62  ;;  %v67_v62 = vld [vmem:[%s2986_s1 + $0x78] sm:$0xff] }
  0x25   :  { %1912 = vmatpush3.bf16.xpose.msra.mxu0 %v370_v25  ;;  %v57_v25 = vld [vmem:[%s2986_s1 + $0x28] sm:$0xff] }
  0x26   :  { %2054 = vmatprep.subr.msk.bf16.mxu0 %vm308_vm0, %v161_v26  ;;  %v880_v26 = vld [vmem:[%s2983_s5 + $0xc8] sm:$0xff]  ;;  %1009 = vperm.xlu0 %2066, %v879_v23   ;;  %v121_v36 = vmul.f32 %v105_v16, %v57_v25  ;;  %v46_v23 = vld [vmem:[%s2985_s0 + $0x50] sm:$0xff] }
  0x27   :  { %1014 = vperm.xlu1 %2067, %v880_v26   ;;  %v62_v25 = vld [vmem:[%s2986_s1 + $0x50] sm:$0xff]  ;;  %v63_v26 = vld [vmem:[%s2986_s1 + $0x58] sm:$0xff] }
  0x2a   :  { %929 = vperm.xlu0 %2066, %v863_v37  }
  0x2b   :  { %934 = vperm.xlu1 %2067, %v864_v38  }
  0x2d   :  { %1914 = vmatpush3.bf16.xpose.msra.mxu0 %v373_v33  ;;  %v149_v33 = vpack.c.bf16 %v135_v4, %v134_v3  ;;  %v867_v3 = vld [vmem:[%s2983_s5 + $0x60] sm:$0xff]  ;;  %v868_v4 = vld [vmem:[%s2983_s5 + $0x68] sm:$0xff] }
  0x2e   :  { %2055 = vmatprep.subr.msk.bf16.mxu0 %vm308_vm0, %v162_v34  ;;  %v89_v34 = vmul.f32 %v2283_v10, %v41_v20  ;;  %v107_v10 = vsub.f32 1.0, %v2298_v14  ;;  %1019 = vperm.xlu0 %2066, %v881_v47   ;;  %v109_v14 = vsub.f32 1.0, %v2312_v18  ;;  %v111_v18 = vsub.f32 1.0, %v2326_v22  ;;  %v1143_v47 = vld [vmem:[%s2987_s7] sm:$0xff] }
  0x2f   :  { %v674_v50 = vsel %vm308_vm0, %v149_v33, 0  ;;  %1024 = vperm.xlu1 %2067, %v882_v49   ;;  %v1144_v49 = vld [vmem:[%s2987_s7 + $0x8] sm:$0xff] }
  0x30   :  { %v137_v40 = vadd.f32 %v121_v36, %v89_v34  ;;  %v123_v56 = vmul.f32 %v107_v10, %v59_v46  ;;  %v125_v16 = vmul.f32 %v109_v14, %v61_v0  ;;  %v94_v34 = vmul.f32 %v2321_v21, %v46_v23  ;;  %v870_v10 = vld [vmem:[%s2983_s5 + $0x78] sm:$0xff]  ;;  %v65_v46 = vld [vmem:[%s2986_s1 + $0x68] sm:$0xff]  ;;  %v1153_v23 = vld [vmem:[%s2987_s7 + $0x50] sm:$0xff] }
  0x31   :  { %v95_v36 = vmul.f32 %v2326_v22, %v47_v24  ;;  %v127_v38 = vmul.f32 %v111_v18, %v63_v26  ;;  %v113_v22 = vsub.f32 1.0, %v2355_v31  ;;  %v2079_v0 = vld [vmem:[%s2982_s4 + $0x58] sm:$0xff]   ;;  %v2082_v18 = vld [vmem:[%s2982_s4 + $0x70] sm:$0xff]  }
  0x32   :  { %v150_v53 = vpack.c.bf16 %v137_v40, %v136_v39  ;;  %v139_v60 = vadd.f32 %v123_v56, %v91_v54  ;;  %939 = vperm.xlu0 %2066, %v865_v57   ;;  %v141_v20 = vadd.f32 %v125_v16, %v93_v12  ;;  %v97_v54 = vmul.f32 %v2355_v31, %v49_v42  ;;  %v1145_v57 = vld [vmem:[%s2987_s7 + $0x10] sm:$0xff]  ;;  %v1150_v16 = vld [vmem:[%s2987_s7 + $0x38] sm:$0xff]  ;;  %v2097_v42 = vld [vmem:[%s2984_s3 + $0x68] sm:$0xff]  }
  0x33   :  { %944 = vperm.xlu1 %2067, %v866_v58   ;;  %v143_v40 = vadd.f32 %v127_v38, %v95_v36  ;;  %v129_v56 = vmul.f32 %v113_v22, %v65_v46  ;;  %v1146_v58 = vld [vmem:[%s2987_s7 + $0x18] sm:$0xff]  ;;  %v115_v31 = vsub.f32 1.0, %v2391_v44  ;;  %v2089_v38 = vld [vmem:[%s2984_s3 + $0x28] sm:$0xff]  }
  0x34   :  { %v677_v6 = vsel %vm308_vm0, %v150_v53, 0  ;;  %v1154_v24 = vld [vmem:[%s2987_s7 + $0x58] sm:$0xff]  ;;  %v2093_v22 = vld [vmem:[%s2984_s3 + $0x48] sm:$0xff]  }
  0x35   :  { %1916 = vmatpush3.bf16.xpose.msra.mxu0 %v376_v51  ;;  %v2072_v51 = vld [vmem:[%s2982_s4 + $0x20] sm:$0xff]   ;;  %v145_v14 = vadd.f32 %v129_v56, %v97_v54  ;;  %v131_v12 = vmul.f32 %v115_v31, %v67_v62  ;;  %v2083_v26 = vld [vmem:[%s2982_s4 + $0x78] sm:$0xff]  }
  0x36   :  { %2056 = vmatprep.subr.msk.bf16.mxu0 %vm308_vm0, %v163_v52  ;;  %v90_v52 = vmul.f32 %v2293_v13, %v42_v41  ;;  %v108_v13 = vsub.f32 1.0, %v2307_v17  ;;  %v110_v17 = vsub.f32 1.0, %v2321_v21  ;;  %v112_v21 = vsub.f32 1.0, %v2347_v29  ;;  %v48_v41 = vld [vmem:[%s2985_s0 + $0x60] sm:$0xff]  ;;  %v2087_v36 = vld [vmem:[%s2984_s3 + $0x18] sm:$0xff]  }
  0x37   :  { %1034 = vperm.xlu1 %2067, %v884_v5   ;;  %v2080_v5 = vld [vmem:[%s2982_s4 + $0x60] sm:$0xff]   ;;  %v2099_v46 = vld [vmem:[%s2984_s3 + $0x78] sm:$0xff]  }
  0x38   :  { %v138_v59 = vadd.f32 %v122_v55, %v90_v52  ;;  %v124_v15 = vmul.f32 %v108_v13, %v60_v63  ;;  %v126_v37 = vmul.f32 %v110_v17, %v62_v25  ;;  %v96_v52 = vmul.f32 %v2347_v29, %v48_v41  ;;  %v1147_v63 = vld [vmem:[%s2987_s7 + $0x20] sm:$0xff]  ;;  %v1152_v17 = vld [vmem:[%s2987_s7 + $0x48] sm:$0xff] }
  0x39   :  { %v128_v55 = vmul.f32 %v112_v21, %v64_v45  ;;  %v114_v29 = vsub.f32 1.0, %v2386_v43  ;;  %v1155_v25 = vld [vmem:[%s2987_s7 + $0x60] sm:$0xff]  ;;  %v2098_v45 = vld [vmem:[%s2984_s3 + $0x70] sm:$0xff]  }
  0x3a   :  { %v151_v11 = vpack.c.bf16 %v139_v60, %v138_v59  ;;  %v140_v19 = vadd.f32 %v124_v15, %v92_v8  ;;  %v142_v39 = vadd.f32 %v126_v37, %v94_v34  ;;  %v50_v59 = vld [vmem:[%s2985_s0 + $0x70] sm:$0xff]  ;;  %v51_v60 = vld [vmem:[%s2985_s0 + $0x78] sm:$0xff]  ;;  %v2085_v34 = vld [vmem:[%s2984_s3 + $0x8] sm:$0xff]  }
  0x3b   :  { %954 = vperm.xlu1 %2067, %v868_v4   ;;  %v144_v13 = vadd.f32 %v128_v55, %v96_v52  ;;  %v99_v8 = vmul.f32 %v2391_v44, %v51_v60  ;;  %v1149_v15 = vld [vmem:[%s2987_s7 + $0x30] sm:$0xff]  ;;  %v2081_v4 = vld [vmem:[%s2982_s4 + $0x68] sm:$0xff]   ;;  %v2088_v37 = vld [vmem:[%s2984_s3 + $0x20] sm:$0xff]  }
  0x3c   :  { %v680_v32 = vsel %vm308_vm0, %v151_v11, 0  ;;  %v152_v35 = vpack.c.bf16 %v141_v20, %v140_v19  ;;  %v2092_v21 = vld [vmem:[%s2984_s3 + $0x40] sm:$0xff]  }
  0x3d   :  { %1918 = vmatpush3.bf16.xpose.msra.mxu0 %v379_v1  ;;  %v883_v1 = vld [vmem:[%s2983_s5 + $0xe0] sm:$0xff]  ;;  %v147_v44 = vadd.f32 %v131_v12, %v99_v8 }
  0x3e   :  { %2057 = vmatprep.subr.msk.bf16.mxu0 %vm308_vm0, %v148_v2  ;;  %v2073_v2 = vld [vmem:[%s2982_s4 + $0x28] sm:$0xff]   ;;  %1029 = vperm.xlu0 %2066, %v883_v1   ;;  %v2096_v41 = vld [vmem:[%s2984_s3 + $0x60] sm:$0xff]  }
  0x3f   :  { %v1148_v1 = vld [vmem:[%s2987_s7 + $0x28] sm:$0xff] }
  0x42   :  { %949 = vperm.xlu0 %2066, %v867_v3   ;;  %v1151_v3 = vld [vmem:[%s2987_s7 + $0x40] sm:$0xff] }
  0x44   :  { %1920 = vmatmul.mubr.msk.bf16.vlgmr.msra.gmra.mrb[0].mxu0 %vm308_vm0, %v2069_v27  ;;  %v885_v27 = vld [vmem:[%s2983_s5 + $0xf0] sm:$0xff] }
  0x45   :  { %1952 = vmatpush3.bf16.xpose.msra.mxu0 %v671_v28  ;;  %1923 = vmatprep.mubr.msk.bf16.mxu0 %vm308_vm0, %v2070_v30  ;;  %v2075_v28 = vld [vmem:[%s2982_s4 + $0x38] sm:$0xff]  }
  0x46   :  { %2058 = vmatprep.subr.msk.bf16.mxu0 %vm308_vm0, %v149_v33  ;;  %v886_v30 = vld [vmem:[%s2983_s5 + $0xf8] sm:$0xff]  ;;  %v2076_v33 = vld [vmem:[%s2982_s4 + $0x40] sm:$0xff]   ;;  %1039 = vperm.xlu0 %2066, %v885_v27   ;;  %v1156_v27 = vld [vmem:[%s2987_s7 + $0x68] sm:$0xff] }
  0x47   :  { %1044 = vperm.xlu1 %2067, %v886_v30  }
  0x4a   :  { %959 = vperm.xlu0 %2066, %v869_v9   ;;  %v2090_v9 = vld [vmem:[%s2984_s3 + $0x30] sm:$0xff]  }
  0x4b   :  { %964 = vperm.xlu1 %2067, %v870_v10   ;;  %v2091_v10 = vld [vmem:[%s2984_s3 + $0x38] sm:$0xff]  }
  0x4c   :  { %1924 = vmatmul.mubr.msk.bf16.gmra.mrb[4].mxu0 %vm308_vm0, %v2071_v48  ;;  %v2077_v48 = vld [vmem:[%s2982_s4 + $0x48] sm:$0xff]  }
  0x4d   :  { %1954 = vmatpush3.bf16.xpose.msra.mxu0 %v674_v50  ;;  %1927 = vmatprep.mubr.msk.bf16.mxu0 %vm308_vm0, %v2072_v51  ;;  %v683_v50 = vsel %vm308_vm0, %v152_v35, 0  ;;  %v2078_v51 = vld [vmem:[%s2982_s4 + $0x50] sm:$0xff]  }
  0x4e   :  { %2059 = vmatprep.subr.msk.bf16.mxu0 %vm308_vm0, %v150_v53  ;;  %v153_v53 = vpack.c.bf16 %v143_v40, %v142_v39  ;;  %1161 = vperm.xlu0 %2066, %v1143_v47   ;;  %v2094_v39 = vld [vmem:[%s2984_s3 + $0x50] sm:$0xff]   ;;  %v2095_v40 = vld [vmem:[%s2984_s3 + $0x58] sm:$0xff]  }
  0x4f   :  { %1166 = vperm.xlu1 %2067, %v1144_v49  }
  0x52   :  { %1171 = vperm.xlu0 %2066, %v1145_v57  }
  0x53   :  { %1176 = vperm.xlu1 %2067, %v1146_v58  }
  0x54   :  { %1928 = vmatmul.mubr.msk.bf16.gmra.mrb[8].mxu0 %vm308_vm0, %v2073_v2  ;;  %v686_v2 = vsel %vm308_vm0, %v153_v53, 0 }
  0x55   :  { %1956 = vmatpush3.bf16.xpose.msra.mxu0 %v677_v6  ;;  %1931 = vmatprep.mubr.msk.bf16.mxu0 %vm308_vm0, %v2074_v7  ;;  %v98_v6 = vmul.f32 %v2386_v43, %v50_v59  ;;  %v154_v7 = vpack.c.bf16 %v145_v14, %v144_v13 }
  0x56   :  { %2060 = vmatprep.subr.msk.bf16.mxu0 %vm308_vm0, %v151_v11  ;;  %v130_v11 = vmul.f32 %v114_v29, %v66_v61  ;;  %1181 = vperm.xlu0 %2066, %v1147_v63  }
  0x57   :  { %1186 = vperm.xlu1 %2067, %v1148_v1   ;;  %v689_v19 = vsel %vm308_vm0, %v154_v7, 0 }
  0x58   :  { %v146_v43 = vadd.f32 %v130_v11, %v98_v6 }
  0x5a   :  { %1191 = vperm.xlu0 %2066, %v1149_v15   ;;  %v155_v20 = vpack.c.bf16 %v147_v44, %v146_v43 }
  0x5b   :  { %1196 = vperm.xlu1 %2067, %v1150_v16  }
  0x5c   :  { %1932 = vmatmul.mubr.msk.bf16.gmra.mrb[12].mxu0 %vm308_vm0, %v2075_v28  ;;  %v2084_v28 = vld [vmem:[%s2984_s3] sm:$0xff]   ;;  %v692_v30 = vsel %vm308_vm0, %v155_v20, 0 }
  0x5d   :  { %1958 = vmatpush3.bf16.xpose.msra.mxu0 %v680_v32  ;;  %1935 = vmatprep.mubr.msk.bf16.mxu0 %vm308_vm0, %v2076_v33  ;;  %v1157_v32 = vld [vmem:[%s2987_s7 + $0x70] sm:$0xff]  ;;  %v1158_v33 = vld [vmem:[%s2987_s7 + $0x78] sm:$0xff] }
  0x5e   :  { %2061 = vmatprep.subr.msk.bf16.mxu0 %vm308_vm0, %v152_v35  ;;  %1201 = vperm.xlu0 %2066, %v1151_v3   ;;  %v2086_v35 = vld [vmem:[%s2984_s3 + $0x10] sm:$0xff]  }
  0x5f   :  { %1206 = vperm.xlu1 %2067, %v1152_v17  }
  0x62   :  { %1211 = vperm.xlu0 %2066, %v1153_v23  }
  0x63   :  { %1216 = vperm.xlu1 %2067, %v1154_v24  }
  0x64   :  { %1936 = vmatmul.mubr.msk.bf16.gmra.mrb[16].mxu0 %vm308_vm0, %v2077_v48 }
  0x65   :  { %1960 = vmatpush3.bf16.xpose.msra.mxu0 %v683_v50  ;;  %1939 = vmatprep.mubr.msk.bf16.mxu0 %vm308_vm0, %v2078_v51  ;;  %v2102_v51 = vld [vmem:[%s2988_s6 + $0x4] ss:$8 sps:$4 sm:$0xff]  }
  0x66   :  { %2062 = vmatprep.subr.msk.bf16.mxu0 %vm308_vm0, %v153_v53  ;;  %1221 = vperm.xlu0 %2066, %v1155_v25  }
  0x67   :  { %1226 = vperm.xlu1 %2067, %v1156_v27   ;;  %1351 = vmatprep.mubr.bf16.mxu1 %v2102_v51 }
  0x6a   :  { %1231 = vperm.xlu0 %2066, %v1157_v32  }
  0x6b   :  { %1236 = vperm.xlu1 %2067, %v1158_v33  }
  0x6c   :  { %1940 = vmatmul.mubr.msk.bf16.gmra.mrb[20].mxu0 %vm308_vm0, %v2079_v0 }
  0x6d   :  { %1962 = vmatpush3.bf16.xpose.msra.mxu0 %v686_v2  ;;  %1943 = vmatprep.mubr.msk.bf16.mxu0 %vm308_vm0, %v2080_v5 }
  0x6e   :  { %2063 = vmatprep.subr.msk.bf16.mxu0 %vm308_vm0, %v154_v7 }
  0x74   :  { %1944 = vmatmul.mubr.msk.bf16.gmra.mrb[24].mxu0 %vm308_vm0, %v2081_v4 }
  0x75   :  { %1964 = vmatpush3.bf16.xpose.msra.mxu0 %v689_v19  ;;  %1947 = vmatprep.mubr.msk.bf16.mxu0 %vm308_vm0, %v2082_v18 }
  0x76   :  { %2064 = vmatprep.subr.msk.bf16.mxu0 %vm308_vm0, %v155_v20 }
  0x7c   :  { %1948 = vmatmul.mubr.msk.bf16.gmra.mrb[28].mxu0 %vm308_vm0, %v2083_v26 }
  0x7d   :  { %1966 = vmatpush3.bf16.xpose.msra.mxu0 %v692_v30  ;;  %1967 = vmatprep.mubr.msk.bf16.mxu0 %vm308_vm0, %v2084_v28 }
  0x84   :  { %1968 = vmatmul.mubr.msk.bf16.vlgmr.msra.gmra.mrb[0].mxu0 %vm308_vm0, %v2085_v34 }
  0x85   :  { %1971 = vmatprep.mubr.msk.bf16.mxu0 %vm308_vm0, %v2086_v35  ;;  %v2773_v47 = vpop.permute.xlu0 %969 }
  0x86   :  { %v890_v48 = vpop.permute.xlu1 %889 }
  0x89   :  { %v2775_v49 = vpop.permute.xlu0 %974 }
  0x8a   :  { %v895_v50 = vpop.permute.xlu1 %894 }
  0x8c   :  { %1972 = vmatmul.mubr.msk.bf16.gmra.mrb[4].mxu0 %vm308_vm0, %v2087_v36 }
  0x8d   :  { %1975 = vmatprep.mubr.msk.bf16.mxu0 %vm308_vm0, %v2088_v37  ;;  %v2780_v52 = vpop.permute.xlu0 %979 }
  0x8e   :  { %v2782_v53 = vpop.permute.xlu1 %984 }
  0x91   :  { %v900_v54 = vpop.permute.xlu0 %899 }
  0x92   :  { %v905_v55 = vpop.permute.xlu1 %904 }
  0x94   :  { %1976 = vmatmul.mubr.msk.bf16.gmra.mrb[8].mxu0 %vm308_vm0, %v2089_v38 }
  0x95   :  { %1979 = vmatprep.mubr.msk.bf16.mxu0 %vm308_vm0, %v2090_v9  ;;  %v2784_v56 = vpop.permute.xlu0 %989 }
  0x96   :  { %v2786_v57 = vpop.permute.xlu1 %994 }
  0x99   :  { %v910_v58 = vpop.permute.xlu0 %909 }
  0x9a   :  { %v915_v29 = vpop.permute.xlu1 %914 }
  0x9c   :  { %1980 = vmatmul.mubr.msk.bf16.gmra.mrb[12].mxu0 %vm308_vm0, %v2091_v10 }
  0x9d   :  { %1983 = vmatprep.mubr.msk.bf16.mxu0 %vm308_vm0, %v2092_v21  ;;  %v2788_v31 = vpop.permute.xlu0 %999 }
  0x9e   :  { %v2790_v13 = vpop.permute.xlu1 %1004 }
  0xa1   :  { %v920_v14 = vpop.permute.xlu0 %919 }
  0xa2   :  { %v925_v59 = vpop.permute.xlu1 %924 }
  0xa4   :  { %1984 = vmatmul.mubr.msk.bf16.gmra.mrb[16].mxu0 %vm308_vm0, %v2093_v22 }
  0xa5   :  { %1987 = vmatprep.mubr.msk.bf16.mxu0 %vm308_vm0, %v2094_v39  ;;  %v2792_v60 = vpop.permute.xlu0 %1009 }
  0xa6   :  { %v2794_v61 = vpop.permute.xlu1 %1014 }
  0xa9   :  { %v930_v62 = vpop.permute.xlu0 %929 }
  0xaa   :  { %v935_v63 = vpop.permute.xlu1 %934 }
  0xac   :  { %1988 = vmatmul.mubr.msk.bf16.gmra.mrb[20].mxu0 %vm308_vm0, %v2095_v40 }
  0xad   :  { %1991 = vmatprep.mubr.msk.bf16.mxu0 %vm308_vm0, %v2096_v41  ;;  %v2796_v0 = vpop.permute.xlu0 %1019 }
  0xae   :  { %v2798_v1 = vpop.permute.xlu1 %1024 }
  0xb1   :  { %v940_v2 = vpop.permute.xlu0 %939 }
  0xb2   :  { %v945_v8 = vpop.permute.xlu1 %944 }
  0xb4   :  { %1992 = vmatmul.mubr.msk.bf16.gmra.mrb[24].mxu0 %vm308_vm0, %v2097_v42 }
  0xb5   :  { %1995 = vmatprep.mubr.msk.bf16.mxu0 %vm308_vm0, %v2098_v45 }
  0xb6   :  { %v2804_v20 = vpop.permute.xlu1 %1034 }
  0xba   :  { %v955_v37 = vpop.permute.xlu1 %954 }
  0xbc   :  { %1996 = vmatmul.mubr.msk.bf16.gmra.mrb[28].mxu0 %vm308_vm0, %v2099_v46 }
  0xbd   :  { %v2800_v4 = vpop.permute.xlu0 %1029 }
  0xc1   :  { %v950_v33 = vpop.permute.xlu0 %949 }
  0xc5   :  { %v2812_v41 = vpop.permute.xlu0 %1039 }
 0x157   :  { %v1969_v5 = vpop.f32.mrb[0].mxu0 }
 0x158   :  { %v1049_v6 = vadd.f32 %v1969_v5, %v900_v54  ;;  %v728_v7 = vpop.f32.mrb[1].mxu0 }
 0x159   :  { %v1047_v11 = vadd.f32 %v890_v48, %v728_v7  ;;  %v1970_v12 = vpop.f32.mrb[2].mxu0 }
 0x15a   :  { %v1050_v15 = vadd.f32 %v1970_v12, %v905_v55  ;;  %v731_v16 = vpop.f32.mrb[3].mxu0  ;;  %v1081_v44 = vmax.f32 %v1049_v6, 0.0 }
 0x15b   :  { %v1048_v43 = vadd.f32 %v895_v50, %v731_v16  ;;  %v1079_v17 = vmax.f32 %v1047_v11, 0.0  ;;  %v2814_v50 = vpop.permute.xlu1 %1044 }
 0x15c   :  { %v1082_v3 = vmax.f32 %v1050_v15, 0.0 }
 0x15d   :  { %v1080_v18 = vmax.f32 %v1048_v43, 0.0 }
 0x15e   :  { %v2802_v19 = vpack.c.bf16 %v1082_v3, %v1081_v44 }
 0x15f   :  { %v1973_v23 = vpop.f32.mrb[4].mxu0  ;;  %v2806_v24 = vpack.c.bf16 %v1080_v18, %v1079_v17  ;;  %v965_v11 = vpop.permute.xlu1 %964 }
 0x160   :  { %v1053_v25 = vadd.f32 %v1973_v23, %v920_v14  ;;  %v744_v26 = vpop.f32.mrb[5].mxu0 }
 0x161   :  { %v1051_v27 = vadd.f32 %v910_v58, %v744_v26  ;;  %v1974_v28 = vpop.f32.mrb[6].mxu0 }
 0x162   :  { %v1054_v30 = vadd.f32 %v1974_v28, %v925_v59  ;;  %v747_v32 = vpop.f32.mrb[7].mxu0  ;;  %v1085_v35 = vmax.f32 %v1053_v25, 0.0  ;;  %v960_v59 = vpop.permute.xlu0 %959 }
 0x163   :  { %v1052_v34 = vadd.f32 %v915_v29, %v747_v32  ;;  %v1083_v38 = vmax.f32 %v1051_v27, 0.0 }
 0x164   :  { %v1086_v36 = vmax.f32 %v1054_v30, 0.0 }
 0x165   :  { %v1084_v9 = vmax.f32 %v1052_v34, 0.0 }
 0x166   :  { %v2808_v10 = vpack.c.bf16 %v1086_v36, %v1085_v35 }
 0x167   :  { %v2810_v21 = vpack.c.bf16 %v1084_v9, %v1083_v38  ;;  %v1977_v22 = vpop.f32.mrb[8].mxu0 }
 0x168   :  { %v1057_v39 = vadd.f32 %v1977_v22, %v940_v2  ;;  %v760_v40 = vpop.f32.mrb[9].mxu0 }
 0x169   :  { %v1055_v42 = vadd.f32 %v930_v62, %v760_v40  ;;  %v1978_v45 = vpop.f32.mrb[10].mxu0 }
 0x16a   :  { %v1058_v46 = vadd.f32 %v1978_v45, %v945_v8  ;;  %v763_v48 = vpop.f32.mrb[11].mxu0  ;;  %v1089_v54 = vmax.f32 %v1057_v39, 0.0 }
 0x16b   :  { %v1056_v51 = vadd.f32 %v935_v63, %v763_v48  ;;  %v1087_v58 = vmax.f32 %v1055_v42, 0.0 }
 0x16c   :  { %v1090_v55 = vmax.f32 %v1058_v46, 0.0 }
 0x16d   :  { %v1088_v29 = vmax.f32 %v1056_v51, 0.0 }
 0x16e   :  { %v2816_v14 = vpack.c.bf16 %v1090_v55, %v1089_v54 }
 0x16f   :  { %v2818_v5 = vpack.c.bf16 %v1088_v29, %v1087_v58  ;;  %v1981_v2 = vpop.f32.mrb[12].mxu0 }
 0x170   :  { %v1061_v6 = vadd.f32 %v1981_v2, %v960_v59  ;;  %v776_v7 = vpop.f32.mrb[13].mxu0 }
 0x171   :  { %v1059_v62 = vadd.f32 %v950_v33, %v776_v7  ;;  %v1982_v12 = vpop.f32.mrb[14].mxu0 }
 0x172   :  { %v1062_v8 = vadd.f32 %v1982_v12, %v965_v11  ;;  %v779_v15 = vpop.f32.mrb[15].mxu0  ;;  %v1093_v43 = vmax.f32 %v1061_v6, 0.0 }
 0x173   :  { %v1060_v16 = vadd.f32 %v955_v37, %v779_v15  ;;  %v1091_v44 = vmax.f32 %v1059_v62, 0.0 }
 0x174   :  { %v1094_v63 = vmax.f32 %v1062_v8, 0.0 }
 0x175   :  { %v1092_v3 = vmax.f32 %v1060_v16, 0.0 }
 0x176   :  { %v2820_v17 = vpack.c.bf16 %v1094_v63, %v1093_v43 }
 0x177   :  { %v2822_v18 = vpack.c.bf16 %v1092_v3, %v1091_v44  ;;  %v1985_v23 = vpop.f32.mrb[16].mxu0  ;;  %v2109_v3 = vld [vmem:[%s2988_s6 + $0x34] ss:$8 sps:$4 sm:$0xff]  }
 0x178   :  { %v1065_v25 = vadd.f32 %v1985_v23, %v2780_v52  ;;  %v792_v26 = vpop.f32.mrb[17].mxu0  ;;  %v2114_v23 = vld [vmem:[%s2988_s6 + $0x40] ss:$8 sps:$4 sm:$0xff]  }
 0x179   :  { %v1063_v27 = vadd.f32 %v2773_v47, %v792_v26  ;;  %v1986_v28 = vpop.f32.mrb[18].mxu0  ;;  %v2117_v26 = vld [vmem:[%s2988_s6 + $0x50] ss:$8 sps:$4 sm:$0xff]  }
 0x17a   :  { %v1066_v30 = vadd.f32 %v1986_v28, %v2782_v53  ;;  %v795_v32 = vpop.f32.mrb[19].mxu0  ;;  %v1097_v34 = vmax.f32 %v1065_v25, 0.0  ;;  %v2115_v25 = vld [vmem:[%s2988_s6 + $0x54] ss:$8 sps:$4 sm:$0xff]   ;;  %v2120_v28 = vld [vmem:[%s2988_s6 + $0x60] ss:$8 sps:$4 sm:$0xff]  }
 0x17b   :  { %v1064_v33 = vadd.f32 %v2775_v49, %v795_v32  ;;  %v1095_v36 = vmax.f32 %v1063_v27, 0.0  ;;  %v2118_v27 = vld [vmem:[%s2988_s6 + $0x64] ss:$8 sps:$4 sm:$0xff]   ;;  %v2123_v32 = vld [vmem:[%s2988_s6 + $0x70] ss:$8 sps:$4 sm:$0xff]  }
 0x17c   :  { %v1098_v35 = vmax.f32 %v1066_v30, 0.0  ;;  %v2121_v30 = vld [vmem:[%s2988_s6 + $0x74] ss:$8 sps:$4 sm:$0xff]  }
 0x17d   :  { %v1096_v37 = vmax.f32 %v1064_v33, 0.0  ;;  %v2124_v33 = vld [vmem:[%s2989_s8] sm:$0xff]  }
 0x17e   :  { %v1120_v38 = vpack.c.bf16 %v1098_v35, %v1097_v34 }
 0x17f   :  { %v1989_v9 = vpop.f32.mrb[20].mxu0  ;;  %v1119_v22 = vpack.c.bf16 %v1096_v37, %v1095_v36 }
 0x180   :  { %v1069_v39 = vadd.f32 %v1989_v9, %v2788_v31  ;;  %v808_v40 = vpop.f32.mrb[21].mxu0 }
 0x181   :  { %v1067_v52 = vadd.f32 %v2784_v56, %v808_v40  ;;  %v1990_v42 = vpop.f32.mrb[22].mxu0  ;;  %1830 = vmatprep.subr.bf16.mxu1 %v1119_v22  ;;  %v1167_v40 = vpop.permute.xlu1 %1166 }
 0x182   :  { %v1070_v47 = vadd.f32 %v1990_v42, %v2790_v13  ;;  %v811_v53 = vpop.f32.mrb[23].mxu0  ;;  %1831 = vmatpush3.bf16.msra.mxu1 %v2806_v24  ;;  %v1101_v45 = vmax.f32 %v1069_v39, 0.0 }
 0x183   :  { %v1068_v49 = vadd.f32 %v2786_v57, %v811_v53  ;;  %1832 = vmatprep.subr.bf16.mxu1 %v1120_v38  ;;  %v1099_v48 = vmax.f32 %v1067_v52, 0.0  ;;  %v1162_v38 = vpop.permute.xlu0 %1161 }
 0x184   :  { %v1102_v46 = vmax.f32 %v1070_v47, 0.0 }
 0x185   :  { %v1100_v51 = vmax.f32 %v1068_v49, 0.0 }
 0x186   :  { %v1122_v54 = vpack.c.bf16 %v1102_v46, %v1101_v45  ;;  %1833 = vmatpush3.bf16.msra.mxu1 %v2802_v19 }
 0x187   :  { %v1121_v31 = vpack.c.bf16 %v1100_v51, %v1099_v48  ;;  %v1993_v55 = vpop.f32.mrb[24].mxu0  ;;  %v1172_v51 = vpop.permute.xlu0 %1171 }
 0x188   :  { %v1073_v56 = vadd.f32 %v1993_v55, %v2796_v0  ;;  %v824_v58 = vpop.f32.mrb[25].mxu0 }
 0x189   :  { %v1071_v13 = vadd.f32 %v2792_v60, %v824_v58  ;;  %v1994_v29 = vpop.f32.mrb[26].mxu0  ;;  %1834 = vmatprep.subr.bf16.mxu1 %v1121_v31 }
 0x18a   :  { %v1074_v24 = vadd.f32 %v1994_v29, %v2798_v1  ;;  %v827_v57 = vpop.f32.mrb[27].mxu0  ;;  %1835 = vmatpush3.bf16.msra.mxu1 %v2810_v21  ;;  %v1105_v2 = vmax.f32 %v1073_v56, 0.0  ;;  %v1177_v56 = vpop.permute.xlu1 %1176 }
 0x18b   :  { %v1072_v59 = vadd.f32 %v2794_v61, %v827_v57  ;;  %1836 = vmatprep.subr.bf16.mxu1 %v1122_v54  ;;  %v1103_v19 = vmax.f32 %v1071_v13, 0.0 }
 0x18c   :  { %v1106_v6 = vmax.f32 %v1074_v24, 0.0 }
 0x18d   :  { %v1104_v7 = vmax.f32 %v1072_v59, 0.0 }
 0x18e   :  { %v1124_v11 = vpack.c.bf16 %v1106_v6, %v1105_v2  ;;  %1837 = vmatpush3.bf16.msra.mxu1 %v2808_v10 }
 0x18f   :  { %v1123_v0 = vpack.c.bf16 %v1104_v7, %v1103_v19  ;;  %v1997_v62 = vpop.f32.mrb[28].mxu0  ;;  %v1182_v19 = vpop.permute.xlu0 %1181 }
 0x190   :  { %v1077_v60 = vadd.f32 %v1997_v62, %v2812_v41  ;;  %v840_v12 = vpop.f32.mrb[29].mxu0  ;;  %v1187_v62 = vpop.permute.xlu1 %1186 }
 0x191   :  { %v1075_v1 = vadd.f32 %v2800_v4, %v840_v12  ;;  %v1998_v8 = vpop.f32.mrb[30].mxu0  ;;  %1838 = vmatprep.subr.bf16.mxu1 %v1123_v0  ;;  %v2100_v4 = vld [vmem:[%s2988_s6] ss:$8 sps:$4 sm:$0xff]  }
 0x192   :  { %v1078_v21 = vadd.f32 %v1998_v8, %v2814_v50  ;;  %v843_v61 = vpop.f32.mrb[31].mxu0  ;;  %1839 = vmatpush3.bf16.msra.mxu1 %v2818_v5  ;;  %v1109_v16 = vmax.f32 %v1077_v60, 0.0  ;;  %v2105_v50 = vld [vmem:[%s2988_s6 + $0x10] ss:$8 sps:$4 sm:$0xff]   ;;  %v2108_v5 = vld [vmem:[%s2988_s6 + $0x20] ss:$8 sps:$4 sm:$0xff]  }
 0x193   :  { %v1076_v15 = vadd.f32 %v2804_v20, %v843_v61  ;;  %1840 = vmatprep.subr.bf16.mxu1 %v1124_v11  ;;  %v1107_v10 = vmax.f32 %v1075_v1, 0.0  ;;  %v2103_v20 = vld [vmem:[%s2988_s6 + $0x14] ss:$8 sps:$4 sm:$0xff]  }
 0x194   :  { %v1110_v43 = vmax.f32 %v1078_v21, 0.0 }
 0x195   :  { %v1108_v63 = vmax.f32 %v1076_v15, 0.0 }
 0x196   :  { %v1126_v44 = vpack.c.bf16 %v1110_v43, %v1109_v16  ;;  %1841 = vmatpush3.bf16.msra.mxu1 %v2816_v14  ;;  %v2106_v14 = vld [vmem:[%s2988_s6 + $0x24] ss:$8 sps:$4 sm:$0xff]   ;;  %v1192_v43 = vpop.permute.xlu0 %1191 }
 0x197   :  { %v1125_v41 = vpack.c.bf16 %v1108_v63, %v1107_v10 }
 0x199   :  { %1842 = vmatprep.subr.bf16.mxu1 %v1125_v41  ;;  %v1197_v41 = vpop.permute.xlu1 %1196 }
 0x19a   :  { %1843 = vmatpush3.bf16.msra.mxu1 %v2822_v18  ;;  %v2112_v18 = vld [vmem:[%s2988_s6 + $0x44] ss:$8 sps:$4 sm:$0xff]  }
 0x19b   :  { %1844 = vmatprep.subr.bf16.mxu1 %v1126_v44 }
 0x19e   :  { %1845 = vmatpush3.bf16.msra.mxu1 %v2820_v17  ;;  %v2111_v17 = vld [vmem:[%s2988_s6 + $0x30] ss:$8 sps:$4 sm:$0xff]  }
 0x19f   :  { %1999 = vmatprep.subr.bf16.mxu1 %v2124_v33 }
 0x1a1   :  { %1352 = vmatmul.mubr.bf16.vlgmr.msra.gmra.mrb[0].mxu1 %v2100_v4 }
 0x1a2   :  { %1359 = vmatprep.mubr.bf16.mxu1 %v2103_v20 }
 0x1a7   :  { %2000 = vmatpush3.bf16.xpose.msra.mxu1 %v2124_v33 }
 0x1a9   :  { %1360 = vmatmul.mubr.bf16.gmra.mrb[4].mxu1 %v2105_v50 }
 0x1aa   :  { %1367 = vmatprep.mubr.bf16.mxu1 %v2106_v14 }
 0x1b1   :  { %1368 = vmatmul.mubr.bf16.gmra.mrb[8].mxu1 %v2108_v5 }
 0x1b2   :  { %1375 = vmatprep.mubr.bf16.mxu1 %v2109_v3 }
 0x1b9   :  { %1376 = vmatmul.mubr.bf16.gmra.mrb[12].mxu1 %v2111_v17 }
 0x1ba   :  { %1383 = vmatprep.mubr.bf16.mxu1 %v2112_v18 }
 0x1c1   :  { %1384 = vmatmul.mubr.bf16.gmra.mrb[16].mxu1 %v2114_v23  ;;  %v1202_v23 = vpop.permute.xlu0 %1201 }
 0x1c2   :  { %1391 = vmatprep.mubr.bf16.mxu1 %v2115_v25 }
 0x1c9   :  { %1392 = vmatmul.mubr.bf16.gmra.mrb[20].mxu1 %v2117_v26 }
 0x1ca   :  { %1399 = vmatprep.mubr.bf16.mxu1 %v2118_v27 }
 0x1d1   :  { %1400 = vmatmul.mubr.bf16.gmra.mrb[24].mxu1 %v2120_v28  ;;  %v1207_v28 = vpop.permute.xlu1 %1206 }
 0x1d2   :  { %1407 = vmatprep.mubr.bf16.mxu1 %v2121_v30 }
 0x1d9   :  { %1408 = vmatmul.mubr.bf16.gmra.mrb[28].mxu1 %v2123_v32 }
 0x274   :  { %v1846_v34 = vpop.f32.mrb[0].mxu1 }
 0x275   :  { %v1847_v35 = vpop.f32.mrb[1].mxu1 }
 0x276   :  { %v1848_v36 = vadd.f32 %v1847_v35, %v1846_v34  ;;  %v1849_v37 = vpop.f32.mrb[2].mxu1 }
 0x277   :  { %v1850_v9 = vpop.f32.mrb[3].mxu1 }
 0x278   :  { %v1354_v22 = vadd.f32 %v1848_v36, %v1162_v38  ;;  %v1851_v39 = vadd.f32 %v1850_v9, %v1849_v37  ;;  %v1212_v9 = vpop.permute.xlu0 %1211 }
 0x27a   :  { %v1357_v52 = vadd.f32 %v1851_v39, %v1167_v40  ;;  %v1416_v42 = vmax.f32 %v1354_v22, 0.0 }
 0x27c   :  { %v1417_v47 = vmax.f32 %v1357_v52, 0.0  ;;  %v1852_v53 = vpop.f32.mrb[4].mxu1  ;;  %v1217_v52 = vpop.permute.xlu1 %1216 }
 0x27d   :  { %v1853_v49 = vpop.f32.mrb[5].mxu1 }
 0x27e   :  { %v1854_v45 = vadd.f32 %v1853_v49, %v1852_v53  ;;  %v1855_v46 = vpop.f32.mrb[6].mxu1  ;;  %v1432_v48 = vpack.c.bf16 %v1417_v47, %v1416_v42 }
 0x27f   :  { %v1856_v54 = vpop.f32.mrb[7].mxu1 }
 0x280   :  { %v1362_v31 = vadd.f32 %v1854_v45, %v1172_v51  ;;  %v1857_v55 = vadd.f32 %v1856_v54, %v1855_v46  ;;  %1449 = vxpose.xlu0.c.b16.start [1/8] %v1432_v48, 128  ;;  %v1222_v54 = vpop.permute.xlu0 %1221 }
 0x282   :  { %v1365_v58 = vadd.f32 %v1857_v55, %v1177_v56  ;;  %v1418_v13 = vmax.f32 %v1362_v31, 0.0 }
 0x284   :  { %v1419_v29 = vmax.f32 %v1365_v58, 0.0  ;;  %v1858_v24 = vpop.f32.mrb[8].mxu1  ;;  %v1227_v58 = vpop.permute.xlu1 %1226 }
 0x285   :  { %v1859_v57 = vpop.f32.mrb[9].mxu1 }
 0x286   :  { %v1433_v59 = vpack.c.bf16 %v1419_v29, %v1418_v13  ;;  %v1860_v2 = vadd.f32 %v1859_v57, %v1858_v24  ;;  %v1861_v6 = vpop.f32.mrb[10].mxu1 }
 0x287   :  { %v1862_v7 = vpop.f32.mrb[11].mxu1 }
 0x288   :  { %v1370_v11 = vadd.f32 %v1860_v2, %v1182_v19  ;;  %v1863_v0 = vadd.f32 %v1862_v7, %v1861_v6  ;;  %1450 = vxpose.xlu0.c.b16.cont [2/8] %v1433_v59, 128  ;;  %v1232_v7 = vpop.permute.xlu0 %1231 }
 0x28a   :  { %v1373_v60 = vadd.f32 %v1863_v0, %v1187_v62  ;;  %v1420_v12 = vmax.f32 %v1370_v11, 0.0 }
 0x28c   :  { %v1421_v1 = vmax.f32 %v1373_v60, 0.0  ;;  %v1864_v8 = vpop.f32.mrb[12].mxu1  ;;  %v1237_v60 = vpop.permute.xlu1 %1236 }
 0x28d   :  { %v1865_v21 = vpop.f32.mrb[13].mxu1 }
 0x28e   :  { %v1434_v61 = vpack.c.bf16 %v1421_v1, %v1420_v12  ;;  %v1866_v15 = vadd.f32 %v1865_v21, %v1864_v8  ;;  %v1867_v16 = vpop.f32.mrb[14].mxu1 }
 0x28f   :  { %v1868_v10 = vpop.f32.mrb[15].mxu1 }
 0x290   :  { %v1378_v63 = vadd.f32 %v1866_v15, %v1192_v43  ;;  %v1869_v44 = vadd.f32 %v1868_v10, %v1867_v16  ;;  %1451 = vxpose.xlu0.c.b16.cont [3/8] %v1434_v61, 128 }
 0x292   :  { %v1381_v4 = vadd.f32 %v1869_v44, %v1197_v41  ;;  %v1422_v20 = vmax.f32 %v1378_v63, 0.0 }
 0x294   :  { %v1423_v50 = vmax.f32 %v1381_v4, 0.0  ;;  %v1870_v14 = vpop.f32.mrb[16].mxu1  ;;  %v2899_v4 = vld [vmem:[%s2990_s9] ss:$0 sm:$0xff] }
 0x295   :  { %v1871_v5 = vpop.f32.mrb[17].mxu1 }
 0x296   :  { %v1435_v3 = vpack.c.bf16 %v1423_v50, %v1422_v20  ;;  %v1872_v17 = vadd.f32 %v1871_v5, %v1870_v14  ;;  %v1873_v18 = vpop.f32.mrb[18].mxu1 }
 0x297   :  { %v1874_v25 = vpop.f32.mrb[19].mxu1 }
 0x298   :  { %v1386_v26 = vadd.f32 %v1872_v17, %v1202_v23  ;;  %v1875_v27 = vadd.f32 %v1874_v25, %v1873_v18  ;;  %1452 = vxpose.xlu0.c.b16.cont [4/8] %v1435_v3, 128 }
 0x29a   :  { %v1389_v30 = vadd.f32 %v1875_v27, %v1207_v28  ;;  %v1424_v32 = vmax.f32 %v1386_v26, 0.0 }
 0x29c   :  { %v1425_v33 = vmax.f32 %v1389_v30, 0.0  ;;  %v1876_v34 = vpop.f32.mrb[20].mxu1 }
 0x29d   :  { %v1877_v35 = vpop.f32.mrb[21].mxu1 }
 0x29e   :  { %v1436_v36 = vpack.c.bf16 %v1425_v33, %v1424_v32  ;;  %v1878_v37 = vadd.f32 %v1877_v35, %v1876_v34  ;;  %v1879_v38 = vpop.f32.mrb[22].mxu1 }
 0x29f   :  { %v1880_v22 = vpop.f32.mrb[23].mxu1 }
 0x2a0   :  { %v1394_v39 = vadd.f32 %v1878_v37, %v1212_v9  ;;  %v1881_v40 = vadd.f32 %v1880_v22, %v1879_v38  ;;  %1453 = vxpose.xlu0.c.b16.cont [5/8] %v1436_v36, 128 }
 0x2a2   :  { %v1397_v42 = vadd.f32 %v1881_v40, %v1217_v52  ;;  %v1426_v47 = vmax.f32 %v1394_v39, 0.0 }
 0x2a4   :  { %v1427_v53 = vmax.f32 %v1397_v42, 0.0  ;;  %v1882_v49 = vpop.f32.mrb[24].mxu1 }
 0x2a5   :  { %v1883_v45 = vpop.f32.mrb[25].mxu1 }
 0x2a6   :  { %v1437_v46 = vpack.c.bf16 %v1427_v53, %v1426_v47  ;;  %v1884_v48 = vadd.f32 %v1883_v45, %v1882_v49  ;;  %v1885_v51 = vpop.f32.mrb[26].mxu1 }
 0x2a7   :  { %v1886_v31 = vpop.f32.mrb[27].mxu1 }
 0x2a8   :  { %v1402_v55 = vadd.f32 %v1884_v48, %v1222_v54  ;;  %v1887_v56 = vadd.f32 %v1886_v31, %v1885_v51  ;;  %1454 = vxpose.xlu0.c.b16.cont [6/8] %v1437_v46, 128 }
 0x2aa   :  { %v1405_v13 = vadd.f32 %v1887_v56, %v1227_v58  ;;  %v1428_v29 = vmax.f32 %v1402_v55, 0.0 }
 0x2ac   :  { %v1429_v24 = vmax.f32 %v1405_v13, 0.0  ;;  %v1888_v57 = vpop.f32.mrb[28].mxu1 }
 0x2ad   :  { %v1889_v59 = vpop.f32.mrb[29].mxu1 }
 0x2ae   :  { %v1438_v2 = vpack.c.bf16 %v1429_v24, %v1428_v29  ;;  %v1890_v6 = vadd.f32 %v1889_v59, %v1888_v57  ;;  %v1891_v19 = vpop.f32.mrb[30].mxu1 }
 0x2af   :  { %v1892_v11 = vpop.f32.mrb[31].mxu1 }
 0x2b0   :  { %v1410_v0 = vadd.f32 %v1890_v6, %v1232_v7  ;;  %v1893_v62 = vadd.f32 %v1892_v11, %v1891_v19  ;;  %1455 = vxpose.xlu0.c.b16.cont [7/8] %v1438_v2, 128 }
 0x2b2   :  { %v1413_v12 = vadd.f32 %v1893_v62, %v1237_v60  ;;  %v1430_v1 = vmax.f32 %v1410_v0, 0.0 }
 0x2b4   :  { %v1431_v8 = vmax.f32 %v1413_v12, 0.0 }
 0x2b6   :  { %v1439_v21 = vpack.c.bf16 %v1431_v8, %v1430_v1 }
 0x2b8   :  { %1456 = vxpose.xlu0.c.b16.end [8/8] %v1439_v21, 128 }
 0x302   :  { %v1457_v61 = vpop.trf.xlu0 }
 0x303   :  { %2001 = vmatprep.mubr.bf16.mxu1 %v1457_v61 }
 0x306   :  { %v1458_v15 = vpop.trf.xlu0 }
 0x307   :  { %2002 = vmatmul.mubr.bf16.vlgmr.msra.gmra.mrb[32].mxu1 %v1458_v15 }
 0x30a   :  { %v1459_v16 = vpop.trf.xlu0 }
 0x30b   :  { %2005 = vmatprep.mubr.bf16.mxu1 %v1459_v16 }
 0x30e   :  { %v1460_v43 = vpop.trf.xlu0 }
 0x30f   :  { %2006 = vmatmul.mubr.bf16.gmra.mrb[36].mxu1 %v1460_v43 }
 0x312   :  { %v1461_v10 = vpop.trf.xlu0 }
 0x313   :  { %2009 = vmatprep.mubr.bf16.mxu1 %v1461_v10 }
 0x316   :  { %v1462_v63 = vpop.trf.xlu0 }
 0x317   :  { %2010 = vmatmul.mubr.bf16.gmra.mrb[40].mxu1 %v1462_v63 }
 0x31a   :  { %v1463_v44 = vpop.trf.xlu0 }
 0x31b   :  { %2013 = vmatprep.mubr.bf16.mxu1 %v1463_v44 }
 0x31e   :  { %v1464_v41 = vpop.trf.xlu0 }
 0x31f   :  { %2014 = vmatmul.mubr.bf16.gmra.mrb[44].mxu1 %v1464_v41 }
 0x3da   :  { %v2003_v20 = vpop.f32.mrb[32].mxu1 }
 0x3db   :  { %v1514_v50 = vadd.f32 %v2003_v20, %v2899_v4  ;;  %v1505_v14 = vpop.f32.mrb[33].mxu1 }
 0x3dc   :  { %v1506_v5 = vadd.f32 %v2899_v4, %v1505_v14  ;;  %v2004_v3 = vpop.f32.mrb[34].mxu1 }
 0x3dd   :  { %v1768_v17 = vmul.f32 -1.442695, %v1514_v50  ;;  %v1517_v18 = vadd.f32 %v2004_v3, %v2899_v4  ;;  %v1508_v23 = vpop.f32.mrb[35].mxu1 }
 0x3de   :  { %v1766_v25 = vmul.f32 -1.442695, %v1506_v5  ;;  %v1509_v26 = vadd.f32 %v2899_v4, %v1508_v23 }
 0x3df   :  { %2125 = vpow2.f32 %v1768_v17  ;;  %v1769_v27 = vmul.f32 -1.442695, %v1517_v18 }
 0x3e0   :  { %2127 = vpow2.f32 %v1766_v25  ;;  %v1767_v28 = vmul.f32 -1.442695, %v1509_v26 }
 0x3e1   :  { %2129 = vpow2.f32 %v1769_v27 }
 0x3e2   :  { %2131 = vpow2.f32 %v1767_v28  ;;  %v2007_v30 = vpop.f32.mrb[36].mxu1 }
 0x3e3   :  { %v1530_v32 = vadd.f32 %v2007_v30, %v2899_v4  ;;  %v1521_v33 = vpop.f32.mrb[37].mxu1 }
 0x3e4   :  { %v1522_v34 = vadd.f32 %v2899_v4, %v1521_v33  ;;  %v2008_v35 = vpop.f32.mrb[38].mxu1 }
 0x3e5   :  { %v1772_v36 = vmul.f32 -1.442695, %v1530_v32  ;;  %v1533_v37 = vadd.f32 %v2008_v35, %v2899_v4  ;;  %v1524_v38 = vpop.f32.mrb[39].mxu1 }
 0x3e6   :  { %v1770_v9 = vmul.f32 -1.442695, %v1522_v34  ;;  %v1525_v22 = vadd.f32 %v2899_v4, %v1524_v38 }
 0x3e7   :  { %2133 = vpow2.f32 %v1772_v36  ;;  %v1773_v39 = vmul.f32 -1.442695, %v1533_v37 }
 0x3e8   :  { %2135 = vpow2.f32 %v1770_v9  ;;  %v1771_v40 = vmul.f32 -1.442695, %v1525_v22 }
 0x3e9   :  { %v2126_v52 = vpop.eup %2125  ;;  %2137 = vpow2.f32 %v1773_v39 }
 0x3ea   :  { %v2128_v42 = vpop.eup %2127  ;;  %v1618_v47 = vadd.f32 1.0, %v2126_v52  ;;  %2139 = vpow2.f32 %v1771_v40  ;;  %v2011_v53 = vpop.f32.mrb[40].mxu1 }
 0x3eb   :  { %v2130_v49 = vpop.eup %2129  ;;  %v1616_v45 = vadd.f32 1.0, %v2128_v42  ;;  %v1546_v46 = vadd.f32 %v2011_v53, %v2899_v4  ;;  %v1537_v48 = vpop.f32.mrb[41].mxu1 }
 0x3ec   :  { %v2132_v51 = vpop.eup %2131  ;;  %2141 = vrcp.f32 %v1618_v47  ;;  %v1619_v54 = vadd.f32 1.0, %v2130_v49  ;;  %v1538_v31 = vadd.f32 %v2899_v4, %v1537_v48  ;;  %v2012_v55 = vpop.f32.mrb[42].mxu1 }
 0x3ed   :  { %2143 = vrcp.f32 %v1616_v45  ;;  %v1617_v56 = vadd.f32 1.0, %v2132_v51  ;;  %v1776_v58 = vmul.f32 -1.442695, %v1546_v46  ;;  %v1549_v13 = vadd.f32 %v2012_v55, %v2899_v4  ;;  %v1540_v29 = vpop.f32.mrb[43].mxu1 }
 0x3ee   :  { %2145 = vrcp.f32 %v1619_v54  ;;  %v1774_v24 = vmul.f32 -1.442695, %v1538_v31  ;;  %v1541_v57 = vadd.f32 %v2899_v4, %v1540_v29 }
 0x3ef   :  { %2147 = vrcp.f32 %v1617_v56  ;;  %v1777_v59 = vmul.f32 -1.442695, %v1549_v13 }
 0x3f0   :  { %2149 = vpow2.f32 %v1776_v58  ;;  %v1775_v2 = vmul.f32 -1.442695, %v1541_v57 }
 0x3f1   :  { %v2134_v6 = vpop.eup %2133  ;;  %2151 = vpow2.f32 %v1774_v24 }
 0x3f2   :  { %v2136_v19 = vpop.eup %2135  ;;  %v1622_v7 = vadd.f32 1.0, %v2134_v6  ;;  %2153 = vpow2.f32 %v1777_v59  ;;  %v2015_v11 = vpop.f32.mrb[44].mxu1 }
 0x3f3   :  { %v2138_v0 = vpop.eup %2137  ;;  %v1620_v62 = vadd.f32 1.0, %v2136_v19  ;;  %2155 = vpow2.f32 %v1775_v2  ;;  %v1562_v60 = vadd.f32 %v2015_v11, %v2899_v4  ;;  %v1553_v12 = vpop.f32.mrb[45].mxu1 }
 0x3f4   :  { %v2140_v1 = vpop.eup %2139  ;;  %2157 = vrcp.f32 %v1622_v7  ;;  %v1623_v8 = vadd.f32 1.0, %v2138_v0  ;;  %v1554_v21 = vadd.f32 %v2899_v4, %v1553_v12  ;;  %v2016_v61 = vpop.f32.mrb[46].mxu1 }
 0x3f5   :  { %2159 = vrcp.f32 %v1620_v62  ;;  %v1621_v15 = vadd.f32 1.0, %v2140_v1  ;;  %v1780_v16 = vmul.f32 -1.442695, %v1562_v60  ;;  %v1565_v43 = vadd.f32 %v2016_v61, %v2899_v4  ;;  %v1556_v10 = vpop.f32.mrb[47].mxu1 }
 0x3f6   :  { %v2142_v63 = vpop.eup %2141  ;;  %2161 = vrcp.f32 %v1623_v8  ;;  %v1778_v44 = vmul.f32 -1.442695, %v1554_v21  ;;  %v1557_v41 = vadd.f32 %v2899_v4, %v1556_v10 }
 0x3f7   :  { %v2144_v20 = vpop.eup %2143  ;;  %1666 = vst.msk [vmem:[%s2991_s10 + $0x10] sm:$0xff] %vm308_vm0, %v2142_v63  ;;  %2163 = vrcp.f32 %v1621_v15  ;;  %v1781_v50 = vmul.f32 -1.442695, %v1565_v43 }
 0x3f8   :  { %v2146_v14 = vpop.eup %2145  ;;  %1664 = vst.msk [vmem:[%s2991_s10] sm:$0xff] %vm308_vm0, %v2144_v20  ;;  %2165 = vpow2.f32 %v1780_v16  ;;  %v1779_v5 = vmul.f32 -1.442695, %v1557_v41 }
 0x3f9   :  { %v2148_v3 = vpop.eup %2147  ;;  %1667 = vst.msk [vmem:[%s2991_s10 + $0x18] sm:$0xff] %vm308_vm0, %v2146_v14  ;;  %2167 = vpow2.f32 %v1778_v44 }
 0x3fa   :  { %v2150_v4 = vpop.eup %2149  ;;  %1665 = vst.msk [vmem:[%s2991_s10 + $0x8] sm:$0xff] %vm308_vm0, %v2148_v3  ;;  %2169 = vpow2.f32 %v1781_v50 }
 0x3fb   :  { %v2152_v17 = vpop.eup %2151  ;;  %v1626_v18 = vadd.f32 1.0, %v2150_v4  ;;  %2171 = vpow2.f32 %v1779_v5 }
 0x3fc   :  { %v2154_v23 = vpop.eup %2153  ;;  %v1624_v25 = vadd.f32 1.0, %v2152_v17 }
 0x3fd   :  { %v2156_v26 = vpop.eup %2155  ;;  %2173 = vrcp.f32 %v1626_v18  ;;  %v1627_v27 = vadd.f32 1.0, %v2154_v23 }
 0x3fe   :  { %v2158_v28 = vpop.eup %2157  ;;  %2175 = vrcp.f32 %v1624_v25  ;;  %v1625_v30 = vadd.f32 1.0, %v2156_v26 }
 0x3ff   :  { %v2160_v32 = vpop.eup %2159  ;;  %1670 = vst.msk [vmem:[%s2991_s10 + $0x30] sm:$0xff] %vm308_vm0, %v2158_v28  ;;  %2177 = vrcp.f32 %v1627_v27 }
 0x400   :  { %v2162_v33 = vpop.eup %2161  ;;  %1668 = vst.msk [vmem:[%s2991_s10 + $0x20] sm:$0xff] %vm308_vm0, %v2160_v32  ;;  %2179 = vrcp.f32 %v1625_v30 }
 0x401   :  { %v2164_v34 = vpop.eup %2163  ;;  %1671 = vst.msk [vmem:[%s2991_s10 + $0x38] sm:$0xff] %vm308_vm0, %v2162_v33 }
 0x402   :  { %v2166_v35 = vpop.eup %2165  ;;  %1669 = vst.msk [vmem:[%s2991_s10 + $0x28] sm:$0xff] %vm308_vm0, %v2164_v34 }
 0x403   :  { %v2168_v36 = vpop.eup %2167  ;;  %v1630_v37 = vadd.f32 1.0, %v2166_v35 }
 0x404   :  { %v2170_v38 = vpop.eup %2169  ;;  %v1628_v9 = vadd.f32 1.0, %v2168_v36 }
 0x405   :  { %v2172_v22 = vpop.eup %2171  ;;  %2181 = vrcp.f32 %v1630_v37  ;;  %v1631_v39 = vadd.f32 1.0, %v2170_v38 }
 0x406   :  { %2183 = vrcp.f32 %v1628_v9  ;;  %v1629_v40 = vadd.f32 1.0, %v2172_v22 }
 0x407   :  { %v2174_v52 = vpop.eup %2173  ;;  %2185 = vrcp.f32 %v1631_v39 }
 0x408   :  { %v2176_v42 = vpop.eup %2175  ;;  %1674 = vst.msk [vmem:[%s2991_s10 + $0x50] sm:$0xff] %vm308_vm0, %v2174_v52  ;;  %2187 = vrcp.f32 %v1629_v40 }
 0x409   :  { %v2178_v47 = vpop.eup %2177  ;;  %1672 = vst.msk [vmem:[%s2991_s10 + $0x40] sm:$0xff] %vm308_vm0, %v2176_v42 }
 0x40a   :  { %v2180_v53 = vpop.eup %2179  ;;  %1675 = vst.msk [vmem:[%s2991_s10 + $0x58] sm:$0xff] %vm308_vm0, %v2178_v47 }
 0x40b   :  { %1673 = vst.msk [vmem:[%s2991_s10 + $0x48] sm:$0xff] %vm308_vm0, %v2180_v53 }
 0x40f   :  { %v2182_v49 = vpop.eup %2181 }
 0x410   :  { %v2184_v45 = vpop.eup %2183  ;;  %1678 = vst.msk [vmem:[%s2991_s10 + $0x70] sm:$0xff] %vm308_vm0, %v2182_v49 }
 0x411   :  { %v2186_v46 = vpop.eup %2185  ;;  %1676 = vst.msk [vmem:[%s2991_s10 + $0x60] sm:$0xff] %vm308_vm0, %v2184_v45 }
 0x412   :  { %v2188_v48 = vpop.eup %2187  ;;  %1679 = vst.msk [vmem:[%s2991_s10 + $0x78] sm:$0xff] %vm308_vm0, %v2186_v46 }
 0x413   :  { %1677 = vst.msk [vmem:[%s2991_s10 + $0x68] sm:$0xff] %vm308_vm0, %v2188_v48 }

</bundles_post_ra>
